<compile_context>
chip_gen: v7x
topology: tpu7x:2x2x1
jax: 0.10.0
libtpu: 0.0.40
codegen_flags: <defaults>
</compile_context>

<pallas_src>
import jax
import jax.numpy as jnp
import numpy as np
from jax.experimental import pallas as pl
from jax.experimental.pallas import tpu as pltpu

# ---------------- model hyper-parameters (small, deterministic) -------------
N        = 16        # number of graph nodes
IN_DIM   = 8         # input node feature dim
OUT_DIM  = 16        # per-head output dim
H        = 4         # number of attention heads
EDGE_F   = 6         # edge feature dim
HID      = OUT_DIM   # edge-MLP hidden width (Linear(edge_f, out_dim))
ALPHA    = 0.2       # LeakyReLU negative slope
TEMP     = 0.5       # attention temperature
BN_EPS   = 1e-5


def _leaky(x):
    return jnp.where(x >= 0, x, ALPHA * x)


# ------------------------------ fused kernel ---------------------------------
def gat_fused_kernel(h_ref, wcat_ref, al_ref, ar_ref, ex_ref,
                     w1b_ref, b1b_ref, w2b_ref, adj_ref, b2_ref, o_ref):
    # fc + res_fc as one matmul with a shared LHS load: (N, IN) @ (IN, 2*H*D)
    ft_all = jnp.dot(h_ref[...], wcat_ref[...],
                     preferred_element_type=jnp.float32)          # (N, 2*H*D)
    ft  = ft_all[:, :H * OUT_DIM]                                  # (N, H*D)
    res = ft_all[:, H * OUT_DIM:]                                  # (N, H*D)

    # Edge-MLP layer 1 for every (dst, src) pair at once via a block-diagonal
    # weight:  (N, N*EDGE_F) @ (N*EDGE_F, N*HID) -> (N_dst, N_src*HID)
    eh = jnp.dot(ex_ref[...], w1b_ref[...],
                 preferred_element_type=jnp.float32) + b1b_ref[...]
    eh = _leaky(eh)                                                # (N, N*HID)

    adj = adj_ref[...]                                             # (N, N) [dst, src]
    neg = jnp.float32(-1e30)

    for hh in range(H):  # fully unrolled head loop (H = 4)
        ft_h  = ft[:,  hh * OUT_DIM:(hh + 1) * OUT_DIM]            # (N, D)
        res_h = res[:, hh * OUT_DIM:(hh + 1) * OUT_DIM]            # (N, D)
        al_h = al_ref[hh:hh + 1, :]                                # (1, D)
        ar_h = ar_ref[hh:hh + 1, :]                                # (1, D)

        # a1[src] as a row, a2[dst] as a column — no transposes needed.
        a1_row = jax.lax.dot_general(al_h, ft_h, (((1,), (1,)), ((), ())),
                                     preferred_element_type=jnp.float32)  # (1, N)
        a2_col = jax.lax.dot_general(ft_h, ar_h, (((1,), (1,)), ((), ())),
                                     preferred_element_type=jnp.float32)  # (N, 1)

        # Edge-MLP layer 2 for this head (block-diag weight): (N_dst, N_src)
        e_h = jnp.dot(eh, w2b_ref[hh],
                      preferred_element_type=jnp.float32) + b2_ref[0, hh]

        # edge attention: leaky_relu(a1[src] + a2[dst] + e) * temperature
        logits = _leaky(a1_row + a2_col + e_h) * TEMP
        masked = jnp.where(adj > 0, logits, neg)
        a_max  = jnp.max(masked, axis=1, keepdims=True)            # per-dst max
        aexp   = jnp.exp(masked - a_max) * adj                     # mask BEFORE exp
        z      = jnp.sum(aexp, axis=1, keepdims=True)              # >=1 (self loops)

        agg   = jnp.dot(aexp, ft_h, preferred_element_type=jnp.float32)
        ret_h = agg * pl.reciprocal(z, approx=True) + res_h        # + residual

        # BatchNorm1d (training-mode batch stats, gamma=1, beta=0): stats are
        # per-feature, so each head's 16 columns normalize independently.
        mean_h = jnp.mean(ret_h, axis=0, keepdims=True)
        var_h  = jnp.mean((ret_h - mean_h) ** 2, axis=0, keepdims=True)
        o_ref[:, hh * OUT_DIM:(hh + 1) * OUT_DIM] = (
            (ret_h - mean_h) * jax.lax.rsqrt(var_h + BN_EPS))


# ------------------------------ wrapper ---------------------------------------
def graph_attention_forward(inputs, adj, edge_x, pp):
    """Full GraphAttention.forward(g, inputs, last=False) as ONE Pallas kernel."""
    edge_x2 = edge_x.reshape(N, N * EDGE_F)   # contiguous flatten, no transpose

    vmem = pltpu.MemorySpace.VMEM
    smem = pltpu.MemorySpace.SMEM
    return pl.pallas_call(
        gat_fused_kernel,
        out_shape=jax.ShapeDtypeStruct((N, H * OUT_DIM), jnp.float32),
        in_specs=[
            pl.BlockSpec(memory_space=vmem),   # h
            pl.BlockSpec(memory_space=vmem),   # w_cat  (IN_DIM, 2*H*D)
            pl.BlockSpec(memory_space=vmem),   # attn_l (H, D)
            pl.BlockSpec(memory_space=vmem),   # attn_r (H, D)
            pl.BlockSpec(memory_space=vmem),   # edge_x (N, N*EDGE_F)
            pl.BlockSpec(memory_space=vmem),   # w1_blk (N*EDGE_F, N*HID)
            pl.BlockSpec(memory_space=vmem),   # b1_blk (1, N*HID)
            pl.BlockSpec(memory_space=vmem),   # w2_blk (H, N*HID, N)
            pl.BlockSpec(memory_space=vmem),   # adj    (N, N)
            pl.BlockSpec(memory_space=smem),   # b_e2   (1, H) scalars
        ],
        out_specs=pl.BlockSpec(memory_space=vmem),
    )(inputs, pp["w_cat"], pp["attn_l"], pp["attn_r"], edge_x2,
      pp["w1_blk"], pp["b1_blk"], pp["w2_blk"], adj, pp["b_e2"])


def prepare_pallas_params(params):
    """One-time (outside the forward hot path) parameter repacking."""
    eyeN = jnp.eye(N, dtype=jnp.float32)
    # Block-diagonal edge-MLP layer 1: maps src-s edge feats -> src-s hidden.
    w1_blk = jnp.einsum("st,fk->sftk", eyeN,
                        params["w_e1"]).reshape(N * EDGE_F, N * HID)
    b1_blk = jnp.tile(params["b_e1"], (1, N))                     # (1, N*HID)
    # Per-head block-diagonal layer 2: src-s hidden -> column s of (dst, src).
    w2_blk = jnp.einsum("st,kh->hskt", eyeN,
                        params["w_e2"]).reshape(H, N * HID, N)
    return {
        "w_cat":  jnp.concatenate([params["w_fc"], params["w_res"]], axis=1),
        "attn_l": params["attn_l"],
        "attn_r": params["attn_r"],
        "w1_blk": w1_blk,
        "b1_blk": b1_blk,
        "w2_blk": w2_blk,
        "b_e2":   params["b_e2"],
    }


# ------------------------- pure-JAX reference --------------------------------
def reference_forward(inputs, adj, edge_x, params):
    h = inputs
    ft = h @ params["w_fc"]
    ftr = ft.reshape(N, H, OUT_DIM)
    a1 = jnp.einsum("nhd,hd->nh", ftr, params["attn_l"])
    a2 = jnp.einsum("nhd,hd->nh", ftr, params["attn_r"])
    e = _leaky(edge_x.reshape(N * N, EDGE_F) @ params["w_e1"] + params["b_e1"])
    e = (e @ params["w_e2"] + params["b_e2"]).reshape(N, N, H)        # [dst, src, h]
    logits = a1[None, :, :] + a2[:, None, :] + e
    logits = _leaky(logits) * TEMP
    masked = jnp.where(adj[:, :, None] > 0, logits, -1e30)
    a_max = masked.max(axis=1, keepdims=True)
    aexp = jnp.exp(logits - a_max) * adj[:, :, None]
    z = aexp.sum(axis=1)                                              # (N, H)
    agg = jnp.einsum("dsh,shk->dhk", aexp, ftr) / z[:, :, None]
    ret = agg + (h @ params["w_res"]).reshape(N, H, OUT_DIM)
    ret = ret.reshape(N, H * OUT_DIM)
    mean = ret.mean(axis=0, keepdims=True)
    var = ((ret - mean) ** 2).mean(axis=0, keepdims=True)
    return (ret - mean) * jax.lax.rsqrt(var + BN_EPS)


# ------------------------------ init ------------------------------------------
def xavier_normal(key, shape, fan_in, fan_out, gain=1.414):
    std = gain * np.sqrt(2.0 / (fan_in + fan_out))
    return std * jax.random.normal(key, shape, dtype=jnp.float32)


def make_params(key):
    ks = jax.random.split(key, 8)
    return {
        # fc.weight is (H*D, IN_DIM) in torch; store transposed (IN_DIM, H*D)
        "w_fc":   xavier_normal(ks[0], (IN_DIM, H * OUT_DIM), IN_DIM, H * OUT_DIM),
        "attn_l": xavier_normal(ks[1], (H, OUT_DIM), OUT_DIM, H),
        "attn_r": xavier_normal(ks[2], (H, OUT_DIM), OUT_DIM, H),
        # attn_e: Linear(EDGE_F, OUT_DIM) -> LeakyReLU -> Linear(OUT_DIM, H)
        "w_e1":   xavier_normal(ks[3], (EDGE_F, HID), EDGE_F, HID, gain=1.0),
        "b_e1":   0.01 * jax.random.normal(ks[4], (1, HID), dtype=jnp.float32),
        "w_e2":   xavier_normal(ks[5], (HID, H), HID, H, gain=1.0),
        "b_e2":   0.01 * jax.random.normal(ks[6], (1, H), dtype=jnp.float32),
        # res_fc (in_dim != out_dim)
        "w_res":  xavier_normal(ks[7], (IN_DIM, H * OUT_DIM), IN_DIM, H * OUT_DIM),
    }


# ------------------------------ main ------------------------------------------
if __name__ == "__main__":
    key = jax.random.PRNGKey(0)
    k_par, k_x, k_adj, k_edge = jax.random.split(key, 4)

    params = make_params(k_par)
    pparams = prepare_pallas_params(params)   # one-time repack for the kernel

    inputs = jax.random.normal(k_x, (N, IN_DIM), dtype=jnp.float32)
    # random directed graph + self loops (so every dst has an incoming edge)
    adj = (jax.random.uniform(k_adj, (N, N)) < 0.4).astype(jnp.float32)
    adj = jnp.maximum(adj, jnp.eye(N, dtype=jnp.float32))
    edge_x = jax.random.normal(k_edge, (N, N, EDGE_F), dtype=jnp.float32)

    fwd = jax.jit(graph_attention_forward)
    out = jax.block_until_ready(fwd(inputs, adj, edge_x, pparams))

    ref = jax.block_until_ready(reference_forward(inputs, adj, edge_x, params))
    np.testing.assert_allclose(np.asarray(out), np.asarray(ref), rtol=1e-2, atol=1e-2)

    print("KERNEL_OK")
</pallas_src>

<mosaic_0001>
module attributes {stable_mosaic.version = 11 : i64} {
  func.func @gat_fused_kernel(%arg0: memref<16x8xf32, #tpu.memory_space<vmem>>, %arg1: memref<8x128xf32, #tpu.memory_space<vmem>>, %arg2: memref<4x16xf32, #tpu.memory_space<vmem>>, %arg3: memref<4x16xf32, #tpu.memory_space<vmem>>, %arg4: memref<16x96xf32, #tpu.memory_space<vmem>>, %arg5: memref<96x256xf32, #tpu.memory_space<vmem>>, %arg6: memref<1x256xf32, #tpu.memory_space<vmem>>, %arg7: memref<4x256x16xf32, #tpu.memory_space<vmem>>, %arg8: memref<16x16xf32, #tpu.memory_space<vmem>>, %arg9: memref<1x4xf32, #tpu.memory_space<smem>>, %arg10: memref<16x64xf32, #tpu.memory_space<vmem>>) attributes {dimension_semantics = [], scalar_prefetch = 0 : i64, scratch_operands = 0 : i64, tpu.core_type = #tpu.core_type<tc>} {
    %c0 = arith.constant 0 : index
    %c0_0 = arith.constant 0 : index
    %0 = vector.load %arg0[%c0, %c0_0] : memref<16x8xf32, #tpu.memory_space<vmem>>, vector<16x8xf32>
    %c0_1 = arith.constant 0 : index
    %c0_2 = arith.constant 0 : index
    %1 = vector.load %arg1[%c0_1, %c0_2] : memref<8x128xf32, #tpu.memory_space<vmem>>, vector<8x128xf32>
    %cst = arith.constant dense<0.000000e+00> : vector<16x128xf32>
    %2 = tpu.matmul %0, %1, %cst {dimension_numbers = #tpu.dot_dimension_numbers<[1], [0], [0], [1], [0, 0, 1, 1], [], []>} : vector<16x8xf32>, vector<8x128xf32>, vector<16x128xf32> -> vector<16x128xf32>
    %3 = vector.extract_strided_slice %2 {offsets = [0, 0], sizes = [16, 64], strides = [1, 1]} : vector<16x128xf32> to vector<16x64xf32>
    %4 = vector.extract_strided_slice %2 {offsets = [0, 64], sizes = [16, 64], strides = [1, 1]} : vector<16x128xf32> to vector<16x64xf32>
    %c0_3 = arith.constant 0 : index
    %c0_4 = arith.constant 0 : index
    %5 = vector.load %arg4[%c0_3, %c0_4] : memref<16x96xf32, #tpu.memory_space<vmem>>, vector<16x96xf32>
    %c0_5 = arith.constant 0 : index
    %c0_6 = arith.constant 0 : index
    %6 = vector.load %arg5[%c0_5, %c0_6] : memref<96x256xf32, #tpu.memory_space<vmem>>, vector<96x256xf32>
    %cst_7 = arith.constant dense<0.000000e+00> : vector<16x256xf32>
    %7 = tpu.matmul %5, %6, %cst_7 {dimension_numbers = #tpu.dot_dimension_numbers<[1], [0], [0], [1], [0, 0, 1, 1], [], []>} : vector<16x96xf32>, vector<96x256xf32>, vector<16x256xf32> -> vector<16x256xf32>
    %c0_8 = arith.constant 0 : index
    %c0_9 = arith.constant 0 : index
    %8 = vector.load %arg6[%c0_8, %c0_9] : memref<1x256xf32, #tpu.memory_space<vmem>>, vector<1x256xf32>
    %9 = vector.broadcast %8 : vector<1x256xf32> to vector<16x256xf32>
    %10 = arith.addf %7, %9 : vector<16x256xf32>
    %cst_10 = arith.constant 0.000000e+00 : f32
    %11 = vector.broadcast %cst_10 : f32 to vector<16x256xf32>
    %12 = arith.cmpf oge, %10, %11 : vector<16x256xf32>
    %cst_11 = arith.constant 2.000000e-01 : f32
    %13 = vector.broadcast %cst_11 : f32 to vector<16x256xf32>
    %14 = arith.mulf %13, %10 : vector<16x256xf32>
    %15 = arith.select %12, %10, %14 : vector<16x256xi1>, vector<16x256xf32>
    %c0_12 = arith.constant 0 : index
    %c0_13 = arith.constant 0 : index
    %16 = vector.load %arg8[%c0_12, %c0_13] : memref<16x16xf32, #tpu.memory_space<vmem>>, vector<16x16xf32>
    %17 = vector.extract_strided_slice %3 {offsets = [0, 0], sizes = [16, 16], strides = [1, 1]} : vector<16x64xf32> to vector<16x16xf32>
    %18 = vector.extract_strided_slice %4 {offsets = [0, 0], sizes = [16, 16], strides = [1, 1]} : vector<16x64xf32> to vector<16x16xf32>
    %c0_14 = arith.constant 0 : index
    %c0_15 = arith.constant 0 : index
    %19 = vector.load %arg2[%c0_14, %c0_15] : memref<4x16xf32, #tpu.memory_space<vmem>>, vector<1x16xf32>
    %c0_16 = arith.constant 0 : index
    %c0_17 = arith.constant 0 : index
    %20 = vector.load %arg3[%c0_16, %c0_17] : memref<4x16xf32, #tpu.memory_space<vmem>>, vector<1x16xf32>
    %cst_18 = arith.constant dense<0.000000e+00> : vector<1x16xf32>
    %21 = tpu.matmul %19, %17, %cst_18 {dimension_numbers = #tpu.dot_dimension_numbers<[1], [1], [0], [0], [0, 0, 1, 0], [], []>} : vector<1x16xf32>, vector<16x16xf32>, vector<1x16xf32> -> vector<1x16xf32>
    %cst_19 = arith.constant dense<0.000000e+00> : vector<16x1xf32>
    %22 = tpu.matmul %17, %20, %cst_19 {dimension_numbers = #tpu.dot_dimension_numbers<[1], [1], [0], [0], [0, 0, 1, 0], [], []>} : vector<16x16xf32>, vector<1x16xf32>, vector<16x1xf32> -> vector<16x1xf32>
    %c0_20 = arith.constant 0 : index
    %c0_21 = arith.constant 0 : index
    %c0_22 = arith.constant 0 : index
    %23 = vector.load %arg7[%c0_20, %c0_21, %c0_22] : memref<4x256x16xf32, #tpu.memory_space<vmem>>, vector<1x256x16xf32>
    %24 = vector.shape_cast %23 : vector<1x256x16xf32> to vector<256x16xf32>
    %cst_23 = arith.constant dense<0.000000e+00> : vector<16x16xf32>
    %25 = tpu.matmul %15, %24, %cst_23 {dimension_numbers = #tpu.dot_dimension_numbers<[1], [0], [0], [1], [0, 0, 1, 1], [], []>} : vector<16x256xf32>, vector<256x16xf32>, vector<16x16xf32> -> vector<16x16xf32>
    %c0_24 = arith.constant 0 : index
    %c0_25 = arith.constant 0 : index
    %26 = memref.load %arg9[%c0_24, %c0_25] : memref<1x4xf32, #tpu.memory_space<smem>>
    %27 = vector.broadcast %26 : f32 to vector<16x16xf32>
    %28 = arith.addf %25, %27 : vector<16x16xf32>
    %29 = vector.broadcast %21 : vector<1x16xf32> to vector<16x16xf32>
    %30 = vector.broadcast %22 : vector<16x1xf32> to vector<16x16xf32>
    %31 = arith.addf %29, %30 : vector<16x16xf32>
    %32 = arith.addf %31, %28 : vector<16x16xf32>
    %cst_26 = arith.constant 0.000000e+00 : f32
    %33 = vector.broadcast %cst_26 : f32 to vector<16x16xf32>
    %34 = arith.cmpf oge, %32, %33 : vector<16x16xf32>
    %cst_27 = arith.constant 2.000000e-01 : f32
    %35 = vector.broadcast %cst_27 : f32 to vector<16x16xf32>
    %36 = arith.mulf %35, %32 : vector<16x16xf32>
    %37 = arith.select %34, %32, %36 : vector<16x16xi1>, vector<16x16xf32>
    %cst_28 = arith.constant 5.000000e-01 : f32
    %38 = vector.broadcast %cst_28 : f32 to vector<16x16xf32>
    %39 = arith.mulf %37, %38 : vector<16x16xf32>
    %cst_29 = arith.constant 0.000000e+00 : f32
    %40 = vector.broadcast %cst_29 : f32 to vector<16x16xf32>
    %41 = arith.cmpf ogt, %16, %40 : vector<16x16xf32>
    %cst_30 = arith.constant -1.000000e+30 : f32
    %42 = vector.broadcast %cst_30 : f32 to vector<16x16xf32>
    %43 = arith.select %41, %39, %42 : vector<16x16xi1>, vector<16x16xf32>
    %cst_31 = arith.constant dense<0xFF800000> : vector<16xf32>
    %44 = vector.multi_reduction <maximumf>, %43, %cst_31 [1] : vector<16x16xf32> to vector<16xf32>
    %45 = vector.shape_cast %44 : vector<16xf32> to vector<16x1xf32>
    %46 = vector.broadcast %45 : vector<16x1xf32> to vector<16x16xf32>
    %47 = arith.subf %43, %46 : vector<16x16xf32>
    %48 = math.exp %47 : vector<16x16xf32>
    %49 = arith.mulf %48, %16 : vector<16x16xf32>
    %cst_32 = arith.constant dense<0.000000e+00> : vector<16xf32>
    %50 = vector.multi_reduction <add>, %49, %cst_32 [1] : vector<16x16xf32> to vector<16xf32>
    %51 = vector.shape_cast %50 : vector<16xf32> to vector<16x1xf32>
    %cst_33 = arith.constant dense<0.000000e+00> : vector<16x16xf32>
    %52 = tpu.matmul %49, %17, %cst_33 {dimension_numbers = #tpu.dot_dimension_numbers<[1], [0], [0], [1], [0, 0, 1, 1], [], []>} : vector<16x16xf32>, vector<16x16xf32>, vector<16x16xf32> -> vector<16x16xf32>
    %53 = tpu.reciprocal %51 {approx = true} : vector<16x1xf32> -> vector<16x1xf32>
    %54 = vector.broadcast %53 : vector<16x1xf32> to vector<16x16xf32>
    %55 = arith.mulf %52, %54 : vector<16x16xf32>
    %56 = arith.addf %55, %18 : vector<16x16xf32>
    %cst_34 = arith.constant dense<0.000000e+00> : vector<16xf32>
    %57 = vector.multi_reduction <add>, %56, %cst_34 [0] : vector<16x16xf32> to vector<16xf32>
    %58 = vector.shape_cast %57 : vector<16xf32> to vector<1x16xf32>
    %cst_35 = arith.constant 1.600000e+01 : f32
    %59 = vector.broadcast %cst_35 : f32 to vector<1x16xf32>
    %60 = arith.divf %58, %59 : vector<1x16xf32>
    %61 = vector.broadcast %60 : vector<1x16xf32> to vector<16x16xf32>
    %62 = arith.subf %56, %61 : vector<16x16xf32>
    %63 = arith.mulf %62, %62 : vector<16x16xf32>
    %cst_36 = arith.constant dense<0.000000e+00> : vector<16xf32>
    %64 = vector.multi_reduction <add>, %63, %cst_36 [0] : vector<16x16xf32> to vector<16xf32>
    %65 = vector.shape_cast %64 : vector<16xf32> to vector<1x16xf32>
    %cst_37 = arith.constant 1.600000e+01 : f32
    %66 = vector.broadcast %cst_37 : f32 to vector<1x16xf32>
    %67 = arith.divf %65, %66 : vector<1x16xf32>
    %68 = vector.broadcast %60 : vector<1x16xf32> to vector<16x16xf32>
    %69 = arith.subf %56, %68 : vector<16x16xf32>
    %cst_38 = arith.constant 9.99999974E-6 : f32
    %70 = vector.broadcast %cst_38 : f32 to vector<1x16xf32>
    %71 = arith.addf %67, %70 : vector<1x16xf32>
    %72 = math.rsqrt %71 : vector<1x16xf32>
    %73 = vector.broadcast %72 : vector<1x16xf32> to vector<16x16xf32>
    %74 = arith.mulf %69, %73 : vector<16x16xf32>
    %c0_39 = arith.constant 0 : index
    %c0_40 = arith.constant 0 : index
    %75 = vector.load %arg10[%c0_39, %c0_40] : memref<16x64xf32, #tpu.memory_space<vmem>>, vector<16x16xf32>
    tpu.vector_store %arg10[%c0_39, %c0_40], %74 {strides = array<i32>} : memref<16x64xf32, #tpu.memory_space<vmem>>, vector<16x16xf32>,
    %76 = vector.extract_strided_slice %3 {offsets = [0, 16], sizes = [16, 16], strides = [1, 1]} : vector<16x64xf32> to vector<16x16xf32>
    %77 = vector.extract_strided_slice %4 {offsets = [0, 16], sizes = [16, 16], strides = [1, 1]} : vector<16x64xf32> to vector<16x16xf32>
    %c1 = arith.constant 1 : index
    %c0_41 = arith.constant 0 : index
    %78 = vector.load %arg2[%c1, %c0_41] : memref<4x16xf32, #tpu.memory_space<vmem>>, vector<1x16xf32>
    %c1_42 = arith.constant 1 : index
    %c0_43 = arith.constant 0 : index
    %79 = vector.load %arg3[%c1_42, %c0_43] : memref<4x16xf32, #tpu.memory_space<vmem>>, vector<1x16xf32>
    %cst_44 = arith.constant dense<0.000000e+00> : vector<1x16xf32>
    %80 = tpu.matmul %78, %76, %cst_44 {dimension_numbers = #tpu.dot_dimension_numbers<[1], [1], [0], [0], [0, 0, 1, 0], [], []>} : vector<1x16xf32>, vector<16x16xf32>, vector<1x16xf32> -> vector<1x16xf32>
    %cst_45 = arith.constant dense<0.000000e+00> : vector<16x1xf32>
    %81 = tpu.matmul %76, %79, %cst_45 {dimension_numbers = #tpu.dot_dimension_numbers<[1], [1], [0], [0], [0, 0, 1, 0], [], []>} : vector<16x16xf32>, vector<1x16xf32>, vector<16x1xf32> -> vector<16x1xf32>
    %c1_46 = arith.constant 1 : index
    %c0_47 = arith.constant 0 : index
    %c0_48 = arith.constant 0 : index
    %82 = vector.load %arg7[%c1_46, %c0_47, %c0_48] : memref<4x256x16xf32, #tpu.memory_space<vmem>>, vector<1x256x16xf32>
    %83 = vector.shape_cast %82 : vector<1x256x16xf32> to vector<256x16xf32>
    %cst_49 = arith.constant dense<0.000000e+00> : vector<16x16xf32>
    %84 = tpu.matmul %15, %83, %cst_49 {dimension_numbers = #tpu.dot_dimension_numbers<[1], [0], [0], [1], [0, 0, 1, 1], [], []>} : vector<16x256xf32>, vector<256x16xf32>, vector<16x16xf32> -> vector<16x16xf32>
    %c0_50 = arith.constant 0 : index
    %c1_51 = arith.constant 1 : index
    %85 = memref.load %arg9[%c0_50, %c1_51] : memref<1x4xf32, #tpu.memory_space<smem>>
    %86 = vector.broadcast %85 : f32 to vector<16x16xf32>
    %87 = arith.addf %84, %86 : vector<16x16xf32>
    %88 = vector.broadcast %80 : vector<1x16xf32> to vector<16x16xf32>
    %89 = vector.broadcast %81 : vector<16x1xf32> to vector<16x16xf32>
    %90 = arith.addf %88, %89 : vector<16x16xf32>
    %91 = arith.addf %90, %87 : vector<16x16xf32>
    %cst_52 = arith.constant 0.000000e+00 : f32
    %92 = vector.broadcast %cst_52 : f32 to vector<16x16xf32>
    %93 = arith.cmpf oge, %91, %92 : vector<16x16xf32>
    %cst_53 = arith.constant 2.000000e-01 : f32
    %94 = vector.broadcast %cst_53 : f32 to vector<16x16xf32>
    %95 = arith.mulf %94, %91 : vector<16x16xf32>
    %96 = arith.select %93, %91, %95 : vector<16x16xi1>, vector<16x16xf32>
    %cst_54 = arith.constant 5.000000e-01 : f32
    %97 = vector.broadcast %cst_54 : f32 to vector<16x16xf32>
    %98 = arith.mulf %96, %97 : vector<16x16xf32>
    %cst_55 = arith.constant 0.000000e+00 : f32
    %99 = vector.broadcast %cst_55 : f32 to vector<16x16xf32>
    %100 = arith.cmpf ogt, %16, %99 : vector<16x16xf32>
    %cst_56 = arith.constant -1.000000e+30 : f32
    %101 = vector.broadcast %cst_56 : f32 to vector<16x16xf32>
    %102 = arith.select %100, %98, %101 : vector<16x16xi1>, vector<16x16xf32>
    %cst_57 = arith.constant dense<0xFF800000> : vector<16xf32>
    %103 = vector.multi_reduction <maximumf>, %102, %cst_57 [1] : vector<16x16xf32> to vector<16xf32>
    %104 = vector.shape_cast %103 : vector<16xf32> to vector<16x1xf32>
    %105 = vector.broadcast %104 : vector<16x1xf32> to vector<16x16xf32>
    %106 = arith.subf %102, %105 : vector<16x16xf32>
    %107 = math.exp %106 : vector<16x16xf32>
    %108 = arith.mulf %107, %16 : vector<16x16xf32>
    %cst_58 = arith.constant dense<0.000000e+00> : vector<16xf32>
    %109 = vector.multi_reduction <add>, %108, %cst_58 [1] : vector<16x16xf32> to vector<16xf32>
    %110 = vector.shape_cast %109 : vector<16xf32> to vector<16x1xf32>
    %cst_59 = arith.constant dense<0.000000e+00> : vector<16x16xf32>
    %111 = tpu.matmul %108, %76, %cst_59 {dimension_numbers = #tpu.dot_dimension_numbers<[1], [0], [0], [1], [0, 0, 1, 1], [], []>} : vector<16x16xf32>, vector<16x16xf32>, vector<16x16xf32> -> vector<16x16xf32>
    %112 = tpu.reciprocal %110 {approx = true} : vector<16x1xf32> -> vector<16x1xf32>
    %113 = vector.broadcast %112 : vector<16x1xf32> to vector<16x16xf32>
    %114 = arith.mulf %111, %113 : vector<16x16xf32>
    %115 = arith.addf %114, %77 : vector<16x16xf32>
    %cst_60 = arith.constant dense<0.000000e+00> : vector<16xf32>
    %116 = vector.multi_reduction <add>, %115, %cst_60 [0] : vector<16x16xf32> to vector<16xf32>
    %117 = vector.shape_cast %116 : vector<16xf32> to vector<1x16xf32>
    %cst_61 = arith.constant 1.600000e+01 : f32
    %118 = vector.broadcast %cst_61 : f32 to vector<1x16xf32>
    %119 = arith.divf %117, %118 : vector<1x16xf32>
    %120 = vector.broadcast %119 : vector<1x16xf32> to vector<16x16xf32>
    %121 = arith.subf %115, %120 : vector<16x16xf32>
    %122 = arith.mulf %121, %121 : vector<16x16xf32>
    %cst_62 = arith.constant dense<0.000000e+00> : vector<16xf32>
    %123 = vector.multi_reduction <add>, %122, %cst_62 [0] : vector<16x16xf32> to vector<16xf32>
    %124 = vector.shape_cast %123 : vector<16xf32> to vector<1x16xf32>
    %cst_63 = arith.constant 1.600000e+01 : f32
    %125 = vector.broadcast %cst_63 : f32 to vector<1x16xf32>
    %126 = arith.divf %124, %125 : vector<1x16xf32>
    %127 = vector.broadcast %119 : vector<1x16xf32> to vector<16x16xf32>
    %128 = arith.subf %115, %127 : vector<16x16xf32>
    %cst_64 = arith.constant 9.99999974E-6 : f32
    %129 = vector.broadcast %cst_64 : f32 to vector<1x16xf32>
    %130 = arith.addf %126, %129 : vector<1x16xf32>
    %131 = math.rsqrt %130 : vector<1x16xf32>
    %132 = vector.broadcast %131 : vector<1x16xf32> to vector<16x16xf32>
    %133 = arith.mulf %128, %132 : vector<16x16xf32>
    %c0_65 = arith.constant 0 : index
    %c16 = arith.constant 16 : index
    %134 = vector.load %arg10[%c0_65, %c16] : memref<16x64xf32, #tpu.memory_space<vmem>>, vector<16x16xf32>
    tpu.vector_store %arg10[%c0_65, %c16], %133 {strides = array<i32>} : memref<16x64xf32, #tpu.memory_space<vmem>>, vector<16x16xf32>,
    %135 = vector.extract_strided_slice %3 {offsets = [0, 32], sizes = [16, 16], strides = [1, 1]} : vector<16x64xf32> to vector<16x16xf32>
    %136 = vector.extract_strided_slice %4 {offsets = [0, 32], sizes = [16, 16], strides = [1, 1]} : vector<16x64xf32> to vector<16x16xf32>
    %c2 = arith.constant 2 : index
    %c0_66 = arith.constant 0 : index
    %137 = vector.load %arg2[%c2, %c0_66] : memref<4x16xf32, #tpu.memory_space<vmem>>, vector<1x16xf32>
    %c2_67 = arith.constant 2 : index
    %c0_68 = arith.constant 0 : index
    %138 = vector.load %arg3[%c2_67, %c0_68] : memref<4x16xf32, #tpu.memory_space<vmem>>, vector<1x16xf32>
    %cst_69 = arith.constant dense<0.000000e+00> : vector<1x16xf32>
    %139 = tpu.matmul %137, %135, %cst_69 {dimension_numbers = #tpu.dot_dimension_numbers<[1], [1], [0], [0], [0, 0, 1, 0], [], []>} : vector<1x16xf32>, vector<16x16xf32>, vector<1x16xf32> -> vector<1x16xf32>
    %cst_70 = arith.constant dense<0.000000e+00> : vector<16x1xf32>
    %140 = tpu.matmul %135, %138, %cst_70 {dimension_numbers = #tpu.dot_dimension_numbers<[1], [1], [0], [0], [0, 0, 1, 0], [], []>} : vector<16x16xf32>, vector<1x16xf32>, vector<16x1xf32> -> vector<16x1xf32>
    %c2_71 = arith.constant 2 : index
    %c0_72 = arith.constant 0 : index
    %c0_73 = arith.constant 0 : index
    %141 = vector.load %arg7[%c2_71, %c0_72, %c0_73] : memref<4x256x16xf32, #tpu.memory_space<vmem>>, vector<1x256x16xf32>
    %142 = vector.shape_cast %141 : vector<1x256x16xf32> to vector<256x16xf32>
    %cst_74 = arith.constant dense<0.000000e+00> : vector<16x16xf32>
    %143 = tpu.matmul %15, %142, %cst_74 {dimension_numbers = #tpu.dot_dimension_numbers<[1], [0], [0], [1], [0, 0, 1, 1], [], []>} : vector<16x256xf32>, vector<256x16xf32>, vector<16x16xf32> -> vector<16x16xf32>
    %c0_75 = arith.constant 0 : index
    %c2_76 = arith.constant 2 : index
    %144 = memref.load %arg9[%c0_75, %c2_76] : memref<1x4xf32, #tpu.memory_space<smem>>
    %145 = vector.broadcast %144 : f32 to vector<16x16xf32>
    %146 = arith.addf %143, %145 : vector<16x16xf32>
    %147 = vector.broadcast %139 : vector<1x16xf32> to vector<16x16xf32>
    %148 = vector.broadcast %140 : vector<16x1xf32> to vector<16x16xf32>
    %149 = arith.addf %147, %148 : vector<16x16xf32>
    %150 = arith.addf %149, %146 : vector<16x16xf32>
    %cst_77 = arith.constant 0.000000e+00 : f32
    %151 = vector.broadcast %cst_77 : f32 to vector<16x16xf32>
    %152 = arith.cmpf oge, %150, %151 : vector<16x16xf32>
    %cst_78 = arith.constant 2.000000e-01 : f32
    %153 = vector.broadcast %cst_78 : f32 to vector<16x16xf32>
    %154 = arith.mulf %153, %150 : vector<16x16xf32>
    %155 = arith.select %152, %150, %154 : vector<16x16xi1>, vector<16x16xf32>
    %cst_79 = arith.constant 5.000000e-01 : f32
    %156 = vector.broadcast %cst_79 : f32 to vector<16x16xf32>
    %157 = arith.mulf %155, %156 : vector<16x16xf32>
    %cst_80 = arith.constant 0.000000e+00 : f32
    %158 = vector.broadcast %cst_80 : f32 to vector<16x16xf32>
    %159 = arith.cmpf ogt, %16, %158 : vector<16x16xf32>
    %cst_81 = arith.constant -1.000000e+30 : f32
    %160 = vector.broadcast %cst_81 : f32 to vector<16x16xf32>
    %161 = arith.select %159, %157, %160 : vector<16x16xi1>, vector<16x16xf32>
    %cst_82 = arith.constant dense<0xFF800000> : vector<16xf32>
    %162 = vector.multi_reduction <maximumf>, %161, %cst_82 [1] : vector<16x16xf32> to vector<16xf32>
    %163 = vector.shape_cast %162 : vector<16xf32> to vector<16x1xf32>
    %164 = vector.broadcast %163 : vector<16x1xf32> to vector<16x16xf32>
    %165 = arith.subf %161, %164 : vector<16x16xf32>
    %166 = math.exp %165 : vector<16x16xf32>
    %167 = arith.mulf %166, %16 : vector<16x16xf32>
    %cst_83 = arith.constant dense<0.000000e+00> : vector<16xf32>
    %168 = vector.multi_reduction <add>, %167, %cst_83 [1] : vector<16x16xf32> to vector<16xf32>
    %169 = vector.shape_cast %168 : vector<16xf32> to vector<16x1xf32>
    %cst_84 = arith.constant dense<0.000000e+00> : vector<16x16xf32>
    %170 = tpu.matmul %167, %135, %cst_84 {dimension_numbers = #tpu.dot_dimension_numbers<[1], [0], [0], [1], [0, 0, 1, 1], [], []>} : vector<16x16xf32>, vector<16x16xf32>, vector<16x16xf32> -> vector<16x16xf32>
    %171 = tpu.reciprocal %169 {approx = true} : vector<16x1xf32> -> vector<16x1xf32>
    %172 = vector.broadcast %171 : vector<16x1xf32> to vector<16x16xf32>
    %173 = arith.mulf %170, %172 : vector<16x16xf32>
    %174 = arith.addf %173, %136 : vector<16x16xf32>
    %cst_85 = arith.constant dense<0.000000e+00> : vector<16xf32>
    %175 = vector.multi_reduction <add>, %174, %cst_85 [0] : vector<16x16xf32> to vector<16xf32>
    %176 = vector.shape_cast %175 : vector<16xf32> to vector<1x16xf32>
    %cst_86 = arith.constant 1.600000e+01 : f32
    %177 = vector.broadcast %cst_86 : f32 to vector<1x16xf32>
    %178 = arith.divf %176, %177 : vector<1x16xf32>
    %179 = vector.broadcast %178 : vector<1x16xf32> to vector<16x16xf32>
    %180 = arith.subf %174, %179 : vector<16x16xf32>
    %181 = arith.mulf %180, %180 : vector<16x16xf32>
    %cst_87 = arith.constant dense<0.000000e+00> : vector<16xf32>
    %182 = vector.multi_reduction <add>, %181, %cst_87 [0] : vector<16x16xf32> to vector<16xf32>
    %183 = vector.shape_cast %182 : vector<16xf32> to vector<1x16xf32>
    %cst_88 = arith.constant 1.600000e+01 : f32
    %184 = vector.broadcast %cst_88 : f32 to vector<1x16xf32>
    %185 = arith.divf %183, %184 : vector<1x16xf32>
    %186 = vector.broadcast %178 : vector<1x16xf32> to vector<16x16xf32>
    %187 = arith.subf %174, %186 : vector<16x16xf32>
    %cst_89 = arith.constant 9.99999974E-6 : f32
    %188 = vector.broadcast %cst_89 : f32 to vector<1x16xf32>
    %189 = arith.addf %185, %188 : vector<1x16xf32>
    %190 = math.rsqrt %189 : vector<1x16xf32>
    %191 = vector.broadcast %190 : vector<1x16xf32> to vector<16x16xf32>
    %192 = arith.mulf %187, %191 : vector<16x16xf32>
    %c0_90 = arith.constant 0 : index
    %c32 = arith.constant 32 : index
    %193 = vector.load %arg10[%c0_90, %c32] : memref<16x64xf32, #tpu.memory_space<vmem>>, vector<16x16xf32>
    tpu.vector_store %arg10[%c0_90, %c32], %192 {strides = array<i32>} : memref<16x64xf32, #tpu.memory_space<vmem>>, vector<16x16xf32>,
    %194 = vector.extract_strided_slice %3 {offsets = [0, 48], sizes = [16, 16], strides = [1, 1]} : vector<16x64xf32> to vector<16x16xf32>
    %195 = vector.extract_strided_slice %4 {offsets = [0, 48], sizes = [16, 16], strides = [1, 1]} : vector<16x64xf32> to vector<16x16xf32>
    %c3 = arith.constant 3 : index
    %c0_91 = arith.constant 0 : index
    %196 = vector.load %arg2[%c3, %c0_91] : memref<4x16xf32, #tpu.memory_space<vmem>>, vector<1x16xf32>
    %c3_92 = arith.constant 3 : index
    %c0_93 = arith.constant 0 : index
    %197 = vector.load %arg3[%c3_92, %c0_93] : memref<4x16xf32, #tpu.memory_space<vmem>>, vector<1x16xf32>
    %cst_94 = arith.constant dense<0.000000e+00> : vector<1x16xf32>
    %198 = tpu.matmul %196, %194, %cst_94 {dimension_numbers = #tpu.dot_dimension_numbers<[1], [1], [0], [0], [0, 0, 1, 0], [], []>} : vector<1x16xf32>, vector<16x16xf32>, vector<1x16xf32> -> vector<1x16xf32>
    %cst_95 = arith.constant dense<0.000000e+00> : vector<16x1xf32>
    %199 = tpu.matmul %194, %197, %cst_95 {dimension_numbers = #tpu.dot_dimension_numbers<[1], [1], [0], [0], [0, 0, 1, 0], [], []>} : vector<16x16xf32>, vector<1x16xf32>, vector<16x1xf32> -> vector<16x1xf32>
    %c3_96 = arith.constant 3 : index
    %c0_97 = arith.constant 0 : index
    %c0_98 = arith.constant 0 : index
    %200 = vector.load %arg7[%c3_96, %c0_97, %c0_98] : memref<4x256x16xf32, #tpu.memory_space<vmem>>, vector<1x256x16xf32>
    %201 = vector.shape_cast %200 : vector<1x256x16xf32> to vector<256x16xf32>
    %cst_99 = arith.constant dense<0.000000e+00> : vector<16x16xf32>
    %202 = tpu.matmul %15, %201, %cst_99 {dimension_numbers = #tpu.dot_dimension_numbers<[1], [0], [0], [1], [0, 0, 1, 1], [], []>} : vector<16x256xf32>, vector<256x16xf32>, vector<16x16xf32> -> vector<16x16xf32>
    %c0_100 = arith.constant 0 : index
    %c3_101 = arith.constant 3 : index
    %203 = memref.load %arg9[%c0_100, %c3_101] : memref<1x4xf32, #tpu.memory_space<smem>>
    %204 = vector.broadcast %203 : f32 to vector<16x16xf32>
    %205 = arith.addf %202, %204 : vector<16x16xf32>
    %206 = vector.broadcast %198 : vector<1x16xf32> to vector<16x16xf32>
    %207 = vector.broadcast %199 : vector<16x1xf32> to vector<16x16xf32>
    %208 = arith.addf %206, %207 : vector<16x16xf32>
    %209 = arith.addf %208, %205 : vector<16x16xf32>
    %cst_102 = arith.constant 0.000000e+00 : f32
    %210 = vector.broadcast %cst_102 : f32 to vector<16x16xf32>
    %211 = arith.cmpf oge, %209, %210 : vector<16x16xf32>
    %cst_103 = arith.constant 2.000000e-01 : f32
    %212 = vector.broadcast %cst_103 : f32 to vector<16x16xf32>
    %213 = arith.mulf %212, %209 : vector<16x16xf32>
    %214 = arith.select %211, %209, %213 : vector<16x16xi1>, vector<16x16xf32>
    %cst_104 = arith.constant 5.000000e-01 : f32
    %215 = vector.broadcast %cst_104 : f32 to vector<16x16xf32>
    %216 = arith.mulf %214, %215 : vector<16x16xf32>
    %cst_105 = arith.constant 0.000000e+00 : f32
    %217 = vector.broadcast %cst_105 : f32 to vector<16x16xf32>
    %218 = arith.cmpf ogt, %16, %217 : vector<16x16xf32>
    %cst_106 = arith.constant -1.000000e+30 : f32
    %219 = vector.broadcast %cst_106 : f32 to vector<16x16xf32>
    %220 = arith.select %218, %216, %219 : vector<16x16xi1>, vector<16x16xf32>
    %cst_107 = arith.constant dense<0xFF800000> : vector<16xf32>
    %221 = vector.multi_reduction <maximumf>, %220, %cst_107 [1] : vector<16x16xf32> to vector<16xf32>
    %222 = vector.shape_cast %221 : vector<16xf32> to vector<16x1xf32>
    %223 = vector.broadcast %222 : vector<16x1xf32> to vector<16x16xf32>
    %224 = arith.subf %220, %223 : vector<16x16xf32>
    %225 = math.exp %224 : vector<16x16xf32>
    %226 = arith.mulf %225, %16 : vector<16x16xf32>
    %cst_108 = arith.constant dense<0.000000e+00> : vector<16xf32>
    %227 = vector.multi_reduction <add>, %226, %cst_108 [1] : vector<16x16xf32> to vector<16xf32>
    %228 = vector.shape_cast %227 : vector<16xf32> to vector<16x1xf32>
    %cst_109 = arith.constant dense<0.000000e+00> : vector<16x16xf32>
    %229 = tpu.matmul %226, %194, %cst_109 {dimension_numbers = #tpu.dot_dimension_numbers<[1], [0], [0], [1], [0, 0, 1, 1], [], []>} : vector<16x16xf32>, vector<16x16xf32>, vector<16x16xf32> -> vector<16x16xf32>
    %230 = tpu.reciprocal %228 {approx = true} : vector<16x1xf32> -> vector<16x1xf32>
    %231 = vector.broadcast %230 : vector<16x1xf32> to vector<16x16xf32>
    %232 = arith.mulf %229, %231 : vector<16x16xf32>
    %233 = arith.addf %232, %195 : vector<16x16xf32>
    %cst_110 = arith.constant dense<0.000000e+00> : vector<16xf32>
    %234 = vector.multi_reduction <add>, %233, %cst_110 [0] : vector<16x16xf32> to vector<16xf32>
    %235 = vector.shape_cast %234 : vector<16xf32> to vector<1x16xf32>
    %cst_111 = arith.constant 1.600000e+01 : f32
    %236 = vector.broadcast %cst_111 : f32 to vector<1x16xf32>
    %237 = arith.divf %235, %236 : vector<1x16xf32>
    %238 = vector.broadcast %237 : vector<1x16xf32> to vector<16x16xf32>
    %239 = arith.subf %233, %238 : vector<16x16xf32>
    %240 = arith.mulf %239, %239 : vector<16x16xf32>
    %cst_112 = arith.constant dense<0.000000e+00> : vector<16xf32>
    %241 = vector.multi_reduction <add>, %240, %cst_112 [0] : vector<16x16xf32> to vector<16xf32>
    %242 = vector.shape_cast %241 : vector<16xf32> to vector<1x16xf32>
    %cst_113 = arith.constant 1.600000e+01 : f32
    %243 = vector.broadcast %cst_113 : f32 to vector<1x16xf32>
    %244 = arith.divf %242, %243 : vector<1x16xf32>
    %245 = vector.broadcast %237 : vector<1x16xf32> to vector<16x16xf32>
    %246 = arith.subf %233, %245 : vector<16x16xf32>
    %cst_114 = arith.constant 9.99999974E-6 : f32
    %247 = vector.broadcast %cst_114 : f32 to vector<1x16xf32>
    %248 = arith.addf %244, %247 : vector<1x16xf32>
    %249 = math.rsqrt %248 : vector<1x16xf32>
    %250 = vector.broadcast %249 : vector<1x16xf32> to vector<16x16xf32>
    %251 = arith.mulf %246, %250 : vector<16x16xf32>
    %c0_115 = arith.constant 0 : index
    %c48 = arith.constant 48 : index
    %252 = vector.load %arg10[%c0_115, %c48] : memref<16x64xf32, #tpu.memory_space<vmem>>, vector<16x16xf32>
    tpu.vector_store %arg10[%c0_115, %c48], %251 {strides = array<i32>} : memref<16x64xf32, #tpu.memory_space<vmem>>, vector<16x16xf32>,
    return
  }
}

</mosaic_0001>

<bundles_post_ra>
// kernel: graph_attention_forward.1
= control target key start
LH: loop header
LB: loop body
LE: loop exit
PB: predicated region body
PF: predicated region fallthrough
CT: control target
= control target key end

     0   :  { %15 = vsyncpa [#allocation4], 0  ;;  %s3325_s0 = inlined_call_operand.vmem [shape: f32[16,8], index: 0, kind: input, shape index: {}]   ;;  %s3326_s1 = inlined_call_operand.vmem [shape: f32[8,128], index: 1, kind: input, shape index: {}]   ;;  %s3327_s2 = inlined_call_operand.vmem [shape: f32[4,16], index: 2, kind: input, shape index: {}]   ;;  %s3328_s3 = inlined_call_operand.vmem [shape: f32[4,16], index: 3, kind: input, shape index: {}]   ;;  %s3329_s4 = inlined_call_operand.vmem [shape: f32[16,96], index: 4, kind: input, shape index: {}]   ;;  %s3330_s5 = inlined_call_operand.vmem [shape: f32[96,256], index: 5, kind: input, shape index: {}]   ;;  %s3331_s6 = inlined_call_operand.vmem [shape: f32[1,256], index: 6, kind: input, shape index: {}]   ;;  %s3332_s7 = inlined_call_operand.vmem [shape: f32[4,256,16], index: 7, kind: input, shape index: {}]   ;;  %s3333_s8 = inlined_call_operand.vmem [shape: f32[16,16], index: 8, kind: input, shape index: {}]   ;;  %s3334_s9 = inlined_call_operand.vmem [shape: f32[1,4], index: 9, kind: input, shape index: {}]   ;;  %s3335_s10 = inlined_call_operand.hbm [shape: f32[16,64], index: 10, kind: output, shape index: {}]  }
   0x1   :  { %16 = vsyncpa [#allocation3], 0  ;;  %s41_s15 = sshll.u32 %s3334_s9, 4  ;;  %s42_s15 = int_to_ptr.vmem [resolvable:$true] %s41_s15 }
   0x2   :  { %s2445_s16 = scalar_lea.vmem %s42_s15, 16  ;;  %p2450_p1 = scmp.lt.s32.totalorder %s42_s15, %s42_s15 }
   0x3   :  { %p2446_p0 = scmp.ne.s32.totalorder %s42_s15, %s2445_s16  ;;  %p2451_p2 = scmp.lt.s32.totalorder %s2445_s16, %s2445_s16 }
   0x5   :  { %p2452_p3 = por %p2451_p2, %p2450_p1 }
   0x7   :  { %p2453_p4 = pnand %p2452_p3, %p2446_p0 }
   0x9   :  { %2456 = shalt.err (!%p2453_p4)
}
   0xa   :  { %s2483_s17 = smov [#allocation2]  }
   0xb   :  { %44 = dma.vmem_to_smem %s42_s15, 16, %s2483_s17, [#allocation4]  }
   0xc   :  { %2479 = dma.done.wait [#allocation4], 16  }
   0xd   :  { %2480 = vsyncadd [#allocation4], 4294967280 }
   0xe   :  { %48 = sfence }
   0xf   :  { %v51_v0 = vld [vmem:[%s3326_s1] sm:$0xff]  ;;  %vm52_vm0 = vcmask 64512   ;;  %v50_v2 = vld [vmem:[%s3325_s0 + $0x8] sm:$0xff]  ;;  %v139_v4 = vld [vmem:[%s3330_s5 + $0x18] sm:$0xff]  ;;  %v2484_v10 = vmov 0.0   ;;  %vm172_vm1 = vcmask 785408  }
  0x10   :  { %v49_v1 = vld [vmem:[%s3325_s0] sm:$0xff]  ;;  %2131 = vmatprep.subr.mxu0 %v51_v0  ;;  %v137_v3 = vld [vmem:[%s3330_s5 + $0x8] sm:$0xff]  ;;  %v138_v7 = vld [vmem:[%s3330_s5 + $0x10] sm:$0xff]  ;;  %243 = vmatprep.mubr.f32.mxu1 %v2484_v10  ;;  %v2485_v42 = vmov 0.0|0.0   ;;  %vm2486_vm2 = vmmov 0   ;;  %vm272_vm3 = vcmask 130048  }
  0x11   :  { %2133 = vmatprep.mubr.msk.f32.mxu0 %vm52_vm0, %v49_v1  ;;  %v136_v5 = vld [vmem:[%s3330_s5] sm:$0xff]  ;;  %2132 = vmatpush3.msra.mxu0 %v51_v0  ;;  %v2192_v6 = vpack.c.bf16 %v139_v4, %v137_v3  ;;  %v141_v8 = vld [vmem:[%s3330_s5 + $0x28] sm:$0xff]  ;;  %v143_v9 = vld [vmem:[%s3330_s5 + $0x38] sm:$0xff]  ;;  %s2487_s11 = smov 112   ;;  %s2488_s9 = smov 16   ;;  %v162_v1 = vlaneseq }
  0x12   :  { %2134 = vmatmul.mubr.msk.f32.vlgmr.msra.gmra.mrb[0].mxu0 %vm52_vm0, %v50_v2  ;;  %v2194_v11 = vpack.c.bf16 %v138_v7, %v136_v5  ;;  %v2196_v12 = vpack.c.bf16 %v143_v9, %v141_v8  ;;  %v140_v13 = vld [vmem:[%s3330_s5 + $0x20] sm:$0xff]  ;;  %v142_v14 = vld [vmem:[%s3330_s5 + $0x30] sm:$0xff]  ;;  %v145_v15 = vld [vmem:[%s3330_s5 + $0x48] sm:$0xff]  ;;  %2216 = vmatprep.subr.bf16.mxu0 %v2485_v42  ;;  %s396_s23 = sld [smem:[#allocation2]]  ;;  %s1867_s27 = sld [smem:[#allocation2 + $0x1]] }
  0x13   :  { %2193 = vmatprep.subr.bf16.mxu1 %v2192_v6  ;;  %v147_v16 = vld [vmem:[%s3330_s5 + $0x58] sm:$0xff]  ;;  %v2198_v17 = vpack.c.bf16 %v142_v14, %v140_v13  ;;  %v144_v19 = vld [vmem:[%s3330_s5 + $0x40] sm:$0xff]  ;;  %v146_v20 = vld [vmem:[%s3330_s5 + $0x50] sm:$0xff]  ;;  %2140 = vmatprep.mubr.msk.f32.mxu0 %vm2486_vm2, %v2484_v10  ;;  %v163_v8 = vshrl.u32 %v162_v1, 7  ;;  %s2491_s0 = smov 48   ;;  %s2492_s30 = smov 80  }
  0x14   :  { %2195 = vmatpush1.bf16.msra.mxu1 %v2194_v11  ;;  %v2200_v18 = vpack.c.bf16 %v147_v16, %v145_v15  ;;  %v149_v21 = vld [vmem:[%s3330_s5 + $0x68] sm:$0xff]  ;;  %v151_v22 = vld [vmem:[%s3330_s5 + $0x78] sm:$0xff]  ;;  %v2202_v23 = vpack.c.bf16 %v146_v20, %v144_v19  ;;  %v148_v25 = vld [vmem:[%s3330_s5 + $0x60] sm:$0xff]  ;;  %s3233_s14 = sld [smem:[#allocation2 + $0x2]]  ;;  %s2493_s15 = smov 64  }
  0x15   :  { %2197 = vmatprep.subr.bf16.mxu1 %v2196_v12  ;;  %v2204_v24 = vpack.c.bf16 %v151_v22, %v149_v21  ;;  %v150_v26 = vld [vmem:[%s3330_s5 + $0x70] sm:$0xff]  ;;  %v153_v27 = vld [vmem:[%s3330_s5 + $0x88] sm:$0xff]  ;;  %v155_v28 = vld [vmem:[%s3330_s5 + $0x98] sm:$0xff]  ;;  %v168_v16 = vsub.s32 1, %v163_v8 }
  0x16   :  { %v2206_v29 = vpack.c.bf16 %v150_v26, %v148_v25  ;;  %v2208_v30 = vpack.c.bf16 %v155_v28, %v153_v27  ;;  %v152_v31 = vld [vmem:[%s3330_s5 + $0x80] sm:$0xff]  ;;  %v154_v32 = vld [vmem:[%s3330_s5 + $0x90] sm:$0xff]  ;;  %v157_v33 = vld [vmem:[%s3330_s5 + $0xa8] sm:$0xff]  ;;  %v2759_v26 = vsub.s32 0, %v163_v8 }
  0x17   :  { %v159_v34 = vld [vmem:[%s3330_s5 + $0xb8] sm:$0xff]  ;;  %v2210_v35 = vpack.c.bf16 %v154_v32, %v152_v31  ;;  %v156_v37 = vld [vmem:[%s3330_s5 + $0xa0] sm:$0xff]  ;;  %v158_v38 = vld [vmem:[%s3330_s5 + $0xb0] sm:$0xff] }
  0x18   :  { %2199 = vmatpush1.bf16.msra.mxu1 %v2198_v17  ;;  %v2212_v36 = vpack.c.bf16 %v159_v34, %v157_v33  ;;  %v2214_v39 = vpack.c.bf16 %v158_v38, %v156_v37  ;;  %v134_v40 = vld [vmem:[%s3329_s4] sm:$0xff]  ;;  %v135_v41 = vld [vmem:[%s3329_s4 + $0x8] sm:$0xff]  ;;  %vm2667_vm4 = vmpackc.low %vm272_vm3, %vm272_vm3 }
  0x19   :  { %2201 = vmatprep.subr.bf16.mxu1 %v2200_v18  ;;  %v380_v43 = vld [vmem:[%s3332_s7 + $0x80] sm:$0xff]  ;;  %v381_v44 = vld [vmem:[%s3332_s7 + $0x88] sm:$0xff]  ;;  %v382_v56 = vld [vmem:[%s3332_s7 + $0x90] sm:$0xff] }
  0x1a   :  { %v2659_v45 = vld [vmem:[%s3328_s3] ss:$0 sm:$0xff]  ;;  %v2220_v49 = vpack.c.bf16 %v381_v44, %v380_v43  ;;  %v1834_v53 = vld [vmem:[%s3328_s3 + $0x1] ss:$0 sm:$0xff]  ;;  %v365_v55 = vld [vmem:[%s3332_s7 + $0x8] sm:$0xff] }
  0x1b   :  { %v364_v54 = vld [vmem:[%s3332_s7] sm:$0xff]  ;;  %v383_v57 = vld [vmem:[%s3332_s7 + $0x98] sm:$0xff]  ;;  %v366_v61 = vld [vmem:[%s3332_s7 + $0x10] sm:$0xff] }
  0x1c   :  { %2203 = vmatpush1.bf16.msra.mxu1 %v2202_v23  ;;  %v270_v58 = vld [vmem:[%s3327_s2] sm:$0x1]  ;;  %v2222_v59 = vpack.c.bf16 %v365_v55, %v364_v54  ;;  %v2224_v60 = vpack.c.bf16 %v383_v57, %v382_v56  ;;  %v367_v62 = vld [vmem:[%s3332_s7 + $0x18] sm:$0xff]  ;;  %v385_v0 = vld [vmem:[%s3332_s7 + $0xa8] sm:$0xff] }
  0x1d   :  { %2205 = vmatprep.subr.bf16.mxu1 %v2204_v24  ;;  %v384_v63 = vld [vmem:[%s3332_s7 + $0xa0] sm:$0xff]  ;;  %v2226_v2 = vpack.c.bf16 %v367_v62, %v366_v61  ;;  %v369_v5 = vld [vmem:[%s3332_s7 + $0x28] sm:$0xff]  ;;  %v386_v6 = vld [vmem:[%s3332_s7 + $0xb0] sm:$0xff] }
  0x1e   :  { %v2228_v3 = vpack.c.bf16 %v385_v0, %v384_v63  ;;  %v368_v4 = vld [vmem:[%s3332_s7 + $0x20] sm:$0xff]  ;;  %v387_v7 = vld [vmem:[%s3332_s7 + $0xb8] sm:$0xff]  ;;  %v370_v12 = vld [vmem:[%s3332_s7 + $0x30] sm:$0xff] }
  0x1f   :  { %v2230_v9 = vpack.c.bf16 %v369_v5, %v368_v4  ;;  %v2232_v11 = vpack.c.bf16 %v387_v7, %v386_v6  ;;  %v371_v13 = vld [vmem:[%s3332_s7 + $0x38] sm:$0xff]  ;;  %v388_v14 = vld [vmem:[%s3332_s7 + $0xc0] sm:$0xff]  ;;  %v389_v15 = vld [vmem:[%s3332_s7 + $0xc8] sm:$0xff] }
  0x20   :  { %2207 = vmatpush1.bf16.msra.mxu1 %v2206_v29  ;;  %v2234_v17 = vpack.c.bf16 %v371_v13, %v370_v12  ;;  %v160_v18 = vld [vmem:[%s3331_s6] sm:$0x3]  ;;  %v2236_v19 = vpack.c.bf16 %v389_v15, %v388_v14  ;;  %v373_v21 = vld [vmem:[%s3332_s7 + $0x48] sm:$0xff]  ;;  %v390_v22 = vld [vmem:[%s3332_s7 + $0xd0] sm:$0xff] }
  0x21   :  { %2209 = vmatprep.subr.bf16.mxu1 %v2208_v30  ;;  %v372_v20 = vld [vmem:[%s3332_s7 + $0x40] sm:$0xff]  ;;  %v391_v23 = vld [vmem:[%s3332_s7 + $0xd8] sm:$0xff]  ;;  %v169_v24 = vrot.slane %v160_v18, %v168_v16  ;;  %v374_v28 = vld [vmem:[%s3332_s7 + $0x50] sm:$0xff] }
  0x22   :  { %v2238_v25 = vpack.c.bf16 %v373_v21, %v372_v20  ;;  %v2240_v27 = vpack.c.bf16 %v391_v23, %v390_v22  ;;  %v375_v29 = vld [vmem:[%s3332_s7 + $0x58] sm:$0xff]  ;;  %v392_v31 = vld [vmem:[%s3332_s7 + $0xe0] sm:$0xff]  ;;  %v393_v32 = vld [vmem:[%s3332_s7 + $0xe8] sm:$0xff] }
  0x23   :  { %v2244_v37 = vpack.c.bf16 %v393_v32, %v392_v31  ;;  %v394_v43 = vld [vmem:[%s3332_s7 + $0xf0] sm:$0xff]  ;;  %v395_v44 = vld [vmem:[%s3332_s7 + $0xf8] sm:$0xff]  ;;  %v1851_v5 = vld [vmem:[%s3332_s7 + $0x180] sm:$0xff] }
  0x24   :  { %2211 = vmatpush1.bf16.msra.mxu1 %v2210_v35  ;;  %v2242_v35 = vpack.c.bf16 %v375_v29, %v374_v28  ;;  %v2248_v56 = vpack.c.bf16 %v395_v44, %v394_v43  ;;  %v378_v57 = vld [vmem:[%s3332_s7 + $0x70] sm:$0xff]  ;;  %v1852_v6 = vld [vmem:[%s3332_s7 + $0x188] sm:$0xff]  ;;  %v1835_v14 = vld [vmem:[%s3332_s7 + $0x100] sm:$0xff] }
  0x25   :  { %2213 = vmatprep.subr.bf16.mxu1 %v2212_v36  ;;  %v165_v36 = vrot.slane %v160_v18, %v2759_v26  ;;  %v1836_v15 = vld [vmem:[%s3332_s7 + $0x108] sm:$0xff]  ;;  %v1853_v16 = vld [vmem:[%s3332_s7 + $0x190] sm:$0xff]  ;;  %v1838_v23 = vld [vmem:[%s3332_s7 + $0x118] sm:$0xff] }
  0x26   :  { %v2262_v20 = vpack.c.bf16 %v1836_v15, %v1835_v14  ;;  %v1837_v22 = vld [vmem:[%s3332_s7 + $0x110] sm:$0xff]  ;;  %v1839_v29 = vld [vmem:[%s3332_s7 + $0x120] sm:$0xff]  ;;  %v1858_v32 = vld [vmem:[%s3332_s7 + $0x1b8] sm:$0xff] }
  0x27   :  { %v1857_v31 = vld [vmem:[%s3332_s7 + $0x1b0] sm:$0xff]  ;;  %v1844_v43 = vld [vmem:[%s3332_s7 + $0x148] sm:$0xff] }
  0x28   :  { %2215 = vmatpush1.bf16.msra.mxu1 %v2214_v39  ;;  %v376_v39 = vld [vmem:[%s3332_s7 + $0x60] sm:$0xff]  ;;  %v1861_v44 = vld [vmem:[%s3332_s7 + $0x1d0] sm:$0xff]  ;;  %v1875_v48 = vld [vmem:[%s3332_s7 + $0x208] sm:$0xff] }
  0x29   :  { %2256 = vmatprep.subr.bf16.mxu1 %v2485_v42 }
  0x2b   :  { %1823 = vmatmul.mubr.msk.f32.vlgmr.msra.gmra.mrb[0].mxu1 %vm172_vm1, %v134_v40  ;;  %v377_v40 = vld [vmem:[%s3332_s7 + $0x68] sm:$0xff] }
  0x2c   :  { %249 = vmatprep.mubr.f32.mxu1 %v2484_v10  ;;  %v2246_v55 = vpack.c.bf16 %v377_v40, %v376_v39 }
  0x2f   :  { %1824 = vmatmul.mubr.msk.f32.gmra.mrb[2].mxu1 %vm172_vm1, %v135_v41 }
  0x30   :  { %2154 = vmatprep.mubr.msk.f32.mxu1 %vm2486_vm2, %v2484_v10 }
  0xe5   :  { %v2661_v46 = vpop.f32.mrb[0].mxu0 }
  0xe6   :  { %v2663_v47 = vpop.f32.mrb[1].mxu0  ;;  %v2673_v50 = vmul.f32 %v2661_v46, %v2659_v45 }
  0xe7   :  { %v2677_v51 = vpack.i.bf16 %v2661_v46, %v2663_v47  ;;  %v2681_v52 = vpack.c.bf16 %v2661_v46, %v2663_v47 }
  0xe9   :  { %2391 = vrot.lane.b32.xlu0 %v2677_v51, %s2487_s11  ;;  %2219 = vmatpush3.bf16.xpose.msk.msra.mxu0 %vm2667_vm4, %v2681_v52 }
  0xea   :  { %2221 = vmatprep.subr.bf16.mxu0 %v2220_v49 }
  0xed   :  { %725 = vrot.lane.b32.xlu0 %v1834_v53, %s2488_s9 }
  0xf0   :  { %2141 = vmatmul.mubr.msk.f32.vlgmr.msra.gmra.mrb[2].mxu0 %vm272_vm3, %v270_v58  ;;  %v379_v58 = vld [vmem:[%s3332_s7 + $0x78] sm:$0xff] }
  0xf1   :  { %2223 = vmatpush3.bf16.msra.mxu0 %v2222_v59  ;;  %v2250_v62 = vpack.c.bf16 %v379_v58, %v378_v57  ;;  %v1846_v57 = vld [vmem:[%s3332_s7 + $0x158] sm:$0xff]  ;;  %v1863_v58 = vld [vmem:[%s3332_s7 + $0x1e0] sm:$0xff] }
  0xf2   :  { %2225 = vmatprep.subr.bf16.mxu0 %v2224_v60  ;;  %v356_v60 = vmul.f32 %v2659_v45, %v2663_v47 }
  0xf4   :  { %v358_v1 = vsel %vm272_vm3, %v356_v60, 0.0 }
  0xf5   :  { %2227 = vmatpush3.bf16.msra.mxu0 %v2226_v2 }
  0xf6   :  { %2229 = vmatprep.subr.bf16.mxu0 %v2228_v3 }
  0xf9   :  { %2231 = vmatpush3.bf16.msra.mxu0 %v2230_v9 }
  0xfa   :  { %2233 = vmatprep.subr.bf16.mxu0 %v2232_v11  ;;  %v2260_v11 = vpack.c.bf16 %v1852_v6, %v1851_v5  ;;  %v1849_v6 = vld [vmem:[%s3332_s7 + $0x170] sm:$0xff] }
  0xfd   :  { %2235 = vmatpush3.bf16.msra.mxu0 %v2234_v17  ;;  %v1854_v17 = vld [vmem:[%s3332_s7 + $0x198] sm:$0xff] }
  0xfe   :  { %2237 = vmatprep.subr.bf16.mxu0 %v2236_v19  ;;  %v245_v30 = vpop.f32.mrb[0].mxu1  ;;  %v637_v19 = vld [vmem:[%s3327_s2 + $0x1] sm:$0x1]  ;;  %v2264_v21 = vpack.c.bf16 %v1854_v17, %v1853_v16 }
  0xff   :  { %v247_v33 = vpop.f32.mrb[1].mxu1  ;;  %v246_v54 = vadd.f32 %v245_v30, %v165_v36  ;;  %v1840_v30 = vld [vmem:[%s3332_s7 + $0x128] sm:$0xff] }
 0x100   :  { %v248_v34 = vadd.f32 %v247_v33, %v169_v24  ;;  %v2270_v33 = vpack.c.bf16 %v1840_v30, %v1839_v29  ;;  %v2934_v29 = vld [vmem:[%s3333_s8] sm:$0xff] }
 0x101   :  { %2239 = vmatpush3.bf16.msra.mxu0 %v2238_v25  ;;  %v260_v61 = vmul.f32 0.2, %v246_v54  ;;  %vm256_vm6 = vcmp.ge.f32.partialorder %v246_v54, 0.0  ;;  %v1856_v25 = vld [vmem:[%s3332_s7 + $0x1a8] sm:$0xff]  ;;  %vm489_vm10 = vcmp.gt.f32.partialorder %v2934_v29, 0.0 }
 0x102   :  { %2241 = vmatprep.subr.bf16.mxu0 %v2240_v27  ;;  %vm257_vm5 = vcmp.ge.f32.partialorder %v248_v34, 0.0  ;;  %v261_v38 = vmul.f32 0.2, %v248_v34  ;;  %v251_v41 = vpop.f32.mrb[2].mxu1  ;;  %v2266_v27 = vpack.c.bf16 %v1838_v23, %v1837_v22 }
 0x103   :  { %v253_v49 = vpop.f32.mrb[3].mxu1  ;;  %v252_v63 = vadd.f32 %v251_v41, %v165_v36  ;;  %v2798_v2 = vsel %vm256_vm6, %v246_v54, %v260_v61  ;;  %v1842_v36 = vld [vmem:[%s3332_s7 + $0x138] sm:$0xff]  ;;  %v1843_v41 = vld [vmem:[%s3332_s7 + $0x140] sm:$0xff]  ;;  %vm1801_vm6 = vcmask 523648  }
 0x104   :  { %v2786_v53 = vsel %vm257_vm5, %v248_v34, %v261_v38  ;;  %v254_v59 = vadd.f32 %v253_v49, %v169_v24  ;;  %v1855_v24 = vld [vmem:[%s3332_s7 + $0x1a0] sm:$0xff]  ;;  %v2272_v34 = vpack.c.bf16 %v1858_v32, %v1857_v31  ;;  %v1860_v38 = vld [vmem:[%s3332_s7 + $0x1c8] sm:$0xff]  ;;  %v1862_v49 = vld [vmem:[%s3332_s7 + $0x1d8] sm:$0xff]  ;;  %v2278_v54 = vpack.c.bf16 %v1844_v43, %v1843_v41 }
 0x105   :  { %2243 = vmatpush3.bf16.msra.mxu0 %v2242_v35  ;;  %462 = vmatprep.mubr.f32.mxu0 %v2786_v53  ;;  %v262_v3 = vmul.f32 0.2, %v252_v63  ;;  %vm258_vm8 = vcmp.ge.f32.partialorder %v252_v63, 0.0  ;;  %v2268_v28 = vpack.c.bf16 %v1856_v25, %v1855_v24  ;;  %v1841_v35 = vld [vmem:[%s3332_s7 + $0x130] sm:$0xff]  ;;  %vm1412_vm5 = vcmask 392448  }
 0x106   :  { %2245 = vmatprep.subr.bf16.mxu0 %v2244_v37  ;;  %v263_v0 = vmul.f32 0.2, %v254_v59  ;;  %vm259_vm7 = vcmp.ge.f32.partialorder %v254_v59, 0.0  ;;  %v1859_v37 = vld [vmem:[%s3332_s7 + $0x1c0] sm:$0xff]  ;;  %v2274_v39 = vpack.c.bf16 %v1842_v36, %v1841_v35 }
 0x107   :  { %v2806_v45 = vsel %vm258_vm8, %v252_v63, %v262_v3  ;;  %v2276_v40 = vpack.c.bf16 %v1860_v38, %v1859_v37  ;;  %v1848_v63 = vld [vmem:[%s3332_s7 + $0x168] sm:$0xff] }
 0x108   :  { %v2801_v4 = vsel %vm259_vm7, %v254_v59, %v263_v0  ;;  %v1864_v59 = vld [vmem:[%s3332_s7 + $0x1e8] sm:$0xff]  ;;  %v1865_v0 = vld [vmem:[%s3332_s7 + $0x1f0] sm:$0xff] }
 0x109   :  { %2247 = vmatpush3.bf16.msra.mxu0 %v2246_v55  ;;  %v2280_v55 = vpack.c.bf16 %v1862_v49, %v1861_v44  ;;  %v2284_v61 = vpack.c.bf16 %v1864_v59, %v1863_v58 }
 0x10a   :  { %2249 = vmatprep.subr.bf16.mxu0 %v2248_v56  ;;  %v1845_v56 = vld [vmem:[%s3332_s7 + $0x150] sm:$0xff] }
 0x10b   :  { %v2282_v60 = vpack.c.bf16 %v1846_v57, %v1845_v56 }
 0x10c   :  { %359 = vadd.xlane.f32.xlu0 %v358_v1  ;;  %v1866_v1 = vld [vmem:[%s3332_s7 + $0x1f8] sm:$0xff] }
 0x10d   :  { %2251 = vmatpush3.bf16.msra.mxu0 %v2250_v62  ;;  %v1847_v62 = vld [vmem:[%s3332_s7 + $0x160] sm:$0xff]  ;;  %v2288_v5 = vpack.c.bf16 %v1866_v1, %v1865_v0 }
 0x10e   :  { %2253 = vmatprep.subr.bf16.mxu0 %v2681_v52  ;;  %v2286_v3 = vpack.c.bf16 %v1848_v63, %v1847_v62  ;;  %v778_v62 = vstv %s1867_s27 }
 0x110   :  { %463 = vmatmul.mubr.f32.vlgmr.msra.gmra.mrb[4].mxu0 %v2798_v2 }
 0x111   :  { %2255 = vmatpush3.bf16.msra.mxu0 %v2681_v52  ;;  %467 = vmatprep.mubr.f32.mxu0 %v2801_v4 }
 0x114   :  { %468 = vmatmul.mubr.f32.gmra.mrb[6].mxu0 %v2806_v45 }
 0x15b   :  { %v2392_v7 = vpop.permute.xlu0 %2391 }
 0x15c   :  { %v2394_v8 = vunpack.i.h.bf16 %v2392_v7  ;;  %v2393_v9 = vunpack.i.l.bf16 %v2392_v7  ;;  %v1850_v7 = vld [vmem:[%s3332_s7 + $0x178] sm:$0xff] }
 0x15e   :  { %v2815_v12 = vpack.c.bf16 %v2394_v8, %v2393_v9  ;;  %v2290_v8 = vpack.c.bf16 %v1850_v7, %v1849_v6  ;;  %v361_v9 = vsel %vm272_vm3, %v2673_v50, 0.0 }
 0x15f   :  { %v726_v52 = vpop.permute.xlu0 %725 }
 0x160   :  { %2259 = vmatpush3.bf16.xpose.msk.msra.mxu1 %vm2667_vm4, %v2815_v12  ;;  %2293 = vmatprep.subr.bf16.mxu0 %v2815_v12  ;;  %v728_v13 = vmul.f32 %v726_v52, %v2663_v47  ;;  %v729_v18 = vmul.f32 %v2661_v46, %v726_v52 }
 0x161   :  { %2261 = vmatprep.subr.bf16.mxu1 %v2260_v11 }
 0x162   :  { %732 = vrot.lane.b32.xlu1 %v728_v13, %s2487_s11 }
 0x166   :  { %734 = vrot.lane.b32.xlu1 %v729_v18, %s2487_s11  ;;  %v397_v18 = vstv %s396_s23  ;;  %s2490_s11 = smov 32  }
 0x167   :  { %2155 = vmatmul.mubr.msk.f32.vlgmr.msra.gmra.mrb[4].mxu1 %vm272_vm3, %v637_v19 }
 0x168   :  { %2263 = vmatpush3.bf16.msra.mxu1 %v2262_v20  ;;  %843 = vmatprep.mubr.f32.mxu1 %v2786_v53 }
 0x169   :  { %2265 = vmatprep.subr.bf16.mxu1 %v2264_v21 }
 0x16c   :  { %2267 = vmatpush3.bf16.msra.mxu1 %v2266_v27 }
 0x16d   :  { %2269 = vmatprep.subr.bf16.mxu1 %v2268_v28 }
 0x170   :  { %2271 = vmatpush3.bf16.msra.mxu1 %v2270_v33 }
 0x171   :  { %2273 = vmatprep.subr.bf16.mxu1 %v2272_v34 }
 0x174   :  { %2275 = vmatpush3.bf16.msra.mxu1 %v2274_v39  ;;  %v2943_v39 = vld [vmem:[%s3333_s8 + $0x8] sm:$0xff]  ;;  %s2489_s8 = smov 96  }
 0x175   :  { %2277 = vmatprep.subr.bf16.mxu1 %v2276_v40  ;;  %vm490_vm12 = vcmp.gt.f32.partialorder %v2943_v39, 0.0 }
 0x178   :  { %2279 = vmatpush3.bf16.msra.mxu1 %v2278_v54 }
 0x179   :  { %2281 = vmatprep.subr.bf16.mxu1 %v2280_v55 }
 0x17c   :  { %2283 = vmatpush3.bf16.msra.mxu1 %v2282_v60 }
 0x17d   :  { %2285 = vmatprep.subr.bf16.mxu1 %v2284_v61 }
 0x180   :  { %2287 = vmatpush3.bf16.msra.mxu1 %v2286_v3 }
 0x181   :  { %2289 = vmatprep.subr.bf16.mxu1 %v2288_v5 }
 0x184   :  { %2291 = vmatpush3.bf16.msra.mxu1 %v2290_v8 }
 0x185   :  { %2336 = vmatprep.subr.bf16.mxu1 %v2485_v42 }
 0x187   :  { %844 = vmatmul.mubr.f32.vlgmr.msra.gmra.mrb[6].mxu1 %v2798_v2 }
 0x188   :  { %848 = vmatprep.mubr.f32.mxu1 %v2801_v4 }
 0x18a   :  { %362 = vadd.xlane.f32.xlu1 %v361_v9 }
 0x18b   :  { %849 = vmatmul.mubr.f32.gmra.mrb[8].mxu1 %v2806_v45 }
 0x18c   :  { %2182 = vmatprep.mubr.msk.f32.mxu1 %vm2486_vm2, %v2484_v10 }
 0x199   :  { %v360_v21 = vpop.xlane.xlu0 %359 }
 0x1c3   :  { %v348_v11 = vpop.f32.mrb[2].mxu0 }
 0x1c4   :  { %v2142_v52 = vpop.f32.mrb[3].mxu0  ;;  %v476_v17 = vrot.slane %v348_v11, %v2759_v26 }
 0x1c6   :  { %v477_v22 = vadd.f32 %v476_v17, %v360_v21 }
 0x1d4   :  { %v733_v13 = vpop.permute.xlu1 %732 }
 0x1d5   :  { %v738_v14 = vsel %vm272_vm3, %v733_v13, 0.0 }
 0x1d6   :  { %739 = vadd.xlane.f32.xlu0 %v738_v14 }
 0x1d8   :  { %v735_v15 = vpop.permute.xlu1 %734 }
 0x1d9   :  { %v741_v16 = vsel %vm272_vm3, %v735_v15, 0.0 }
 0x1da   :  { %742 = vadd.xlane.f32.xlu0 %v741_v16 }
 0x1e3   :  { %v1986_v50 = vpop.f32.mrb[4].mxu0 }
 0x1e4   :  { %v1987_v19 = vpop.f32.mrb[5].mxu0 }
 0x1e5   :  { %v1988_v20 = vadd.f32 %v1987_v19, %v1986_v50 }
 0x1e7   :  { %v465_v23 = vadd.f32 %v1988_v20, %v397_v18  ;;  %v1989_v24 = vpop.f32.mrb[6].mxu0 }
 0x1e8   :  { %v1990_v25 = vpop.f32.mrb[7].mxu0 }
 0x1e9   :  { %v479_v27 = vadd.f32 %v477_v22, %v465_v23  ;;  %v1991_v28 = vadd.f32 %v1990_v25, %v1989_v24  ;;  %v1873_v22 = vld [vmem:[%s3328_s3 + $0x2] ss:$0 sm:$0xff]  ;;  %v1912_v24 = vld [vmem:[%s3328_s3 + $0x3] ss:$0 sm:$0xff] }
 0x1eb   :  { %vm481_vm9 = vcmp.ge.f32.partialorder %v479_v27, 0.0  ;;  %v483_v30 = vmul.f32 0.2, %v479_v27  ;;  %v470_v35 = vadd.f32 %v1991_v28, %v397_v18 }
 0x1ed   :  { %v485_v31 = vsel %vm481_vm9, %v479_v27, %v483_v30 }
 0x1ee   :  { %v487_v32 = vmul.f32 0.5, %v485_v31 }
 0x1f0   :  { %v491_v33 = vsel %vm489_vm10, %v487_v32, -1e+30 }
 0x1f1   :  { %v493_v34 = vsel %vm272_vm3, %v491_v33, -inf }
 0x1f2   :  { %494 = vmax.xlane.f32.xlu1 %v493_v34 }
 0x217   :  { %v363_v36 = vpop.xlane.xlu1 %362 }
 0x218   :  { %v478_v37 = vadd.f32 %v476_v17, %v363_v36 }
 0x21a   :  { %v480_v38 = vadd.f32 %v478_v37, %v470_v35 }
 0x21c   :  { %v484_v40 = vmul.f32 0.2, %v480_v38  ;;  %vm482_vm11 = vcmp.ge.f32.partialorder %v480_v38, 0.0 }
 0x21e   :  { %v486_v41 = vsel %vm482_vm11, %v480_v38, %v484_v40 }
 0x21f   :  { %v488_v43 = vmul.f32 0.5, %v486_v41  ;;  %v1929_v41 = vld [vmem:[%s3332_s7 + $0x380] sm:$0xff] }
 0x221   :  { %v492_v44 = vsel %vm490_vm12, %v488_v43, -1e+30  ;;  %v1930_v43 = vld [vmem:[%s3332_s7 + $0x388] sm:$0xff] }
 0x222   :  { %v496_v49 = vsel %vm272_vm3, %v492_v44, -inf }
 0x223   :  { %497 = vmax.xlane.f32.xlu0 %v496_v49 }
 0x23a   :  { %v716_v54 = vpop.f32.mrb[4].mxu1 }
 0x23b   :  { %v2156_v55 = vpop.f32.mrb[5].mxu1  ;;  %v857_v63 = vrot.slane %v716_v54, %v2759_v26 }
 0x25a   :  { %v2031_v56 = vpop.f32.mrb[6].mxu1 }
 0x25b   :  { %v2032_v57 = vpop.f32.mrb[7].mxu1 }
 0x25c   :  { %v2033_v58 = vadd.f32 %v2032_v57, %v2031_v56  ;;  %v2340_v56 = vpack.c.bf16 %v1930_v43, %v1929_v41  ;;  %v1876_v41 = vld [vmem:[%s3332_s7 + $0x210] sm:$0xff]  ;;  %v1877_v43 = vld [vmem:[%s3332_s7 + $0x218] sm:$0xff] }
 0x25e   :  { %v2034_v59 = vpop.f32.mrb[8].mxu1  ;;  %v846_v1 = vadd.f32 %v2033_v58, %v778_v62 }
 0x25f   :  { %v2035_v60 = vpop.f32.mrb[9].mxu1 }
 0x260   :  { %v2036_v61 = vadd.f32 %v2035_v60, %v2034_v59 }
 0x262   :  { %v851_v7 = vadd.f32 %v2036_v61, %v778_v62  ;;  %v1913_v61 = vld [vmem:[%s3332_s7 + $0x300] sm:$0xff]  ;;  %v1914_v62 = vld [vmem:[%s3332_s7 + $0x308] sm:$0xff] }
 0x263   :  { %v740_v0 = vpop.xlane.xlu0 %739 }
 0x264   :  { %v858_v3 = vadd.f32 %v857_v63, %v740_v0  ;;  %v1931_v0 = vld [vmem:[%s3332_s7 + $0x390] sm:$0xff] }
 0x266   :  { %v860_v5 = vadd.f32 %v858_v3, %v846_v1  ;;  %v1932_v1 = vld [vmem:[%s3332_s7 + $0x398] sm:$0xff] }
 0x267   :  { %v743_v6 = vpop.xlane.xlu0 %742 }
 0x268   :  { %v864_v8 = vmul.f32 0.2, %v860_v5  ;;  %v859_v9 = vadd.f32 %v857_v63, %v743_v6  ;;  %vm862_vm13 = vcmp.ge.f32.partialorder %v860_v5, 0.0 }
 0x26a   :  { %v861_v11 = vadd.f32 %v859_v9, %v851_v7  ;;  %v866_v52 = vsel %vm862_vm13, %v860_v5, %v864_v8  ;;  %v1415_v7 = vld [vmem:[%s3327_s2 + $0x3] sm:$0x1]  ;;  %v2342_v8 = vpack.c.bf16 %v1914_v62, %v1913_v61  ;;  %v1879_v62 = vld [vmem:[%s3332_s7 + $0x228] sm:$0xff] }
 0x26b   :  { %v868_v13 = vmul.f32 0.5, %v866_v52  ;;  %v1890_v9 = vld [vmem:[%s3332_s7 + $0x280] sm:$0xff]  ;;  %v2344_v52 = vpack.c.bf16 %v1932_v1, %v1931_v0  ;;  %v1897_v0 = vld [vmem:[%s3332_s7 + $0x2b8] sm:$0xff] }
 0x26c   :  { %v865_v14 = vmul.f32 0.2, %v861_v11  ;;  %vm863_vm14 = vcmp.ge.f32.partialorder %v861_v11, 0.0  ;;  %v1878_v61 = vld [vmem:[%s3332_s7 + $0x220] sm:$0xff] }
 0x26d   :  { %v870_v15 = vsel %vm489_vm10, %v868_v13, -1e+30  ;;  %v1915_v13 = vld [vmem:[%s3332_s7 + $0x310] sm:$0xff] }
 0x26e   :  { %v872_v16 = vsel %vm272_vm3, %v870_v15, -inf  ;;  %v867_v17 = vsel %vm863_vm14, %v861_v11, %v865_v14  ;;  %v1891_v11 = vld [vmem:[%s3332_s7 + $0x288] sm:$0xff]  ;;  %v1916_v14 = vld [vmem:[%s3332_s7 + $0x318] sm:$0xff] }
 0x26f   :  { %873 = vmax.xlane.f32.xlu1 %v872_v16  ;;  %v869_v50 = vmul.f32 0.5, %v867_v17  ;;  %v1933_v16 = vld [vmem:[%s3332_s7 + $0x3a0] sm:$0xff]  ;;  %v1934_v17 = vld [vmem:[%s3332_s7 + $0x3a8] sm:$0xff] }
 0x271   :  { %v871_v18 = vsel %vm490_vm12, %v869_v50, -1e+30 }
 0x272   :  { %v875_v19 = vsel %vm272_vm3, %v871_v18, -inf }
 0x273   :  { %876 = vmax.xlane.f32.xlu0 %v875_v19 }
 0x27f   :  { %v495_v20 = vpop.xlane.xlu1 %494 }
 0x280   :  { %v499_v21 = vsub.f32 %v491_v33, %v495_v20  ;;  %2396 = vrot.lane.b32.xlu1 %v2677_v51, %s2489_s8  ;;  %v2346_v20 = vpack.c.bf16 %v1916_v14, %v1915_v13  ;;  %v1881_v13 = vld [vmem:[%s3332_s7 + $0x238] sm:$0xff] }
 0x282   :  { %v501_v23 = vmul.f32 1.442695, %v499_v21  ;;  %v2348_v21 = vpack.c.bf16 %v1934_v17, %v1933_v16  ;;  %v1899_v16 = vld [vmem:[%s3332_s7 + $0x2c8] sm:$0xff] }
 0x284   :  { %2405 = vpow2.f32 %v501_v23  ;;  %1114 = vrot.lane.b32.xlu1 %v1873_v22, %s2490_s11  ;;  %v1917_v22 = vld [vmem:[%s3332_s7 + $0x320] sm:$0xff]  ;;  %v1918_v23 = vld [vmem:[%s3332_s7 + $0x328] sm:$0xff] }
 0x288   :  { %1503 = vrot.lane.b32.xlu1 %v1912_v24, %s2491_s0  ;;  %v1935_v24 = vld [vmem:[%s3332_s7 + $0x3b0] sm:$0xff] }
 0x289   :  { %2401 = vrot.lane.b32.xlu0 %v2677_v51, %s2492_s30 }
 0x28e   :  { %v2406_v25 = vpop.eup %2405 }
 0x28f   :  { %v2969_v27 = vmul.f32 %v2406_v25, %v2934_v29  ;;  %v1936_v25 = vld [vmem:[%s3332_s7 + $0x3b8] sm:$0xff] }
 0x291   :  { %2147 = vmatprep.mubr.msk.f32.mxu0 %vm272_vm3, %v2969_v27 }
 0x2b0   :  { %v498_v28 = vpop.xlane.xlu0 %497 }
 0x2b1   :  { %v500_v30 = vsub.f32 %v492_v44, %v498_v28  ;;  %v1874_v28 = vld [vmem:[%s3332_s7 + $0x200] sm:$0xff] }
 0x2b3   :  { %v503_v31 = vmul.f32 1.442695, %v500_v30  ;;  %v2350_v30 = vpack.c.bf16 %v1918_v23, %v1917_v22  ;;  %v1943_v22 = vld [vmem:[%s3332_s7 + $0x3f0] sm:$0xff]  ;;  %v1944_v23 = vld [vmem:[%s3332_s7 + $0x3f8] sm:$0xff] }
 0x2b5   :  { %2407 = vpow2.f32 %v503_v31  ;;  %v1893_v31 = vld [vmem:[%s3332_s7 + $0x298] sm:$0xff] }
 0x2bf   :  { %v2408_v32 = vpop.eup %2407 }
 0x2c0   :  { %v2974_v33 = vmul.f32 %v2408_v32, %v2943_v39  ;;  %v2352_v32 = vpack.c.bf16 %v1936_v25, %v1935_v24  ;;  %v1882_v25 = vld [vmem:[%s3332_s7 + $0x240] sm:$0xff] }
 0x2c2   :  { %2148 = vmatmul.mubr.msk.f32.vlgmr.msra.gmra.mrb[8].mxu0 %vm272_vm3, %v2974_v33 }
 0x2c3   :  { %2295 = vmatpush3.bf16.msra.mxu0 %v2815_v12 }
 0x2c4   :  { %2296 = vmatprep.subr.bf16.mxu0 %v2485_v42 }
 0x2fc   :  { %v874_v51 = vpop.xlane.xlu1 %873 }
 0x2fd   :  { %v878_v34 = vsub.f32 %v870_v15, %v874_v51  ;;  %v1919_v51 = vld [vmem:[%s3332_s7 + $0x330] sm:$0xff] }
 0x2ff   :  { %v880_v35 = vmul.f32 1.442695, %v878_v34  ;;  %v1920_v34 = vld [vmem:[%s3332_s7 + $0x338] sm:$0xff] }
 0x300   :  { %v877_v36 = vpop.xlane.xlu0 %876  ;;  %v2397_v37 = vpop.permute.xlu1 %2396 }
 0x301   :  { %2409 = vpow2.f32 %v880_v35  ;;  %v879_v38 = vsub.f32 %v871_v18, %v877_v36  ;;  %v2399_v5 = vunpack.i.h.bf16 %v2397_v37  ;;  %v2398_v6 = vunpack.i.l.bf16 %v2397_v37  ;;  %v1026_v35 = vld [vmem:[%s3327_s2 + $0x2] sm:$0x1] }
 0x302   :  { %v2300_v18 = vpack.c.bf16 %v1891_v11, %v1890_v9  ;;  %v2302_v36 = vpack.c.bf16 %v1875_v48, %v1874_v28  ;;  %v1937_v37 = vld [vmem:[%s3332_s7 + $0x3c0] sm:$0xff]  ;;  %v1942_v9 = vld [vmem:[%s3332_s7 + $0x3e8] sm:$0xff] }
 0x303   :  { %v882_v40 = vmul.f32 1.442695, %v879_v38  ;;  %v3041_v19 = vpack.c.bf16 %v2399_v5, %v2398_v6  ;;  %v1938_v38 = vld [vmem:[%s3332_s7 + $0x3c8] sm:$0xff]  ;;  %v1923_v5 = vld [vmem:[%s3332_s7 + $0x350] sm:$0xff]  ;;  %v1924_v6 = vld [vmem:[%s3332_s7 + $0x358] sm:$0xff] }
 0x304   :  { %v2402_v44 = vpop.permute.xlu0 %2401  ;;  %v1115_v12 = vpop.permute.xlu1 %1114  ;;  %v2362_v14 = vpack.c.bf16 %v1924_v6, %v1923_v5  ;;  %v1883_v28 = vld [vmem:[%s3332_s7 + $0x248] sm:$0xff] }
 0x305   :  { %2411 = vpow2.f32 %v882_v40  ;;  %v2404_v42 = vunpack.i.h.bf16 %v2402_v44  ;;  %v2403_v49 = vunpack.i.l.bf16 %v2402_v44  ;;  %v1117_v54 = vmul.f32 %v1115_v12, %v2663_v47 }
 0x306   :  { %v1118_v55 = vmul.f32 %v2661_v46, %v1115_v12  ;;  %v2354_v44 = vpack.c.bf16 %v1920_v34, %v1919_v51  ;;  %v1894_v12 = vld [vmem:[%s3332_s7 + $0x2a0] sm:$0xff]  ;;  %v1928_v51 = vld [vmem:[%s3332_s7 + $0x378] sm:$0xff]  ;;  %v2318_v34 = vpack.c.bf16 %v1883_v28, %v1882_v25 }
 0x307   :  { %v2988_v57 = vpack.c.bf16 %v2404_v42, %v2403_v49  ;;  %1121 = vrot.lane.b32.xlu0 %v1117_v54, %s2489_s8  ;;  %v1895_v42 = vld [vmem:[%s3332_s7 + $0x2a8] sm:$0xff]  ;;  %v2356_v49 = vpack.c.bf16 %v1938_v38, %v1937_v37  ;;  %v1921_v54 = vld [vmem:[%s3332_s7 + $0x340] sm:$0xff]  ;;  %v1885_v37 = vld [vmem:[%s3332_s7 + $0x258] sm:$0xff] }
 0x308   :  { %1123 = vrot.lane.b32.xlu1 %v1118_v55, %s2489_s8  ;;  %v1504_v58 = vpop.permute.xlu1 %1503  ;;  %v1922_v55 = vld [vmem:[%s3332_s7 + $0x348] sm:$0xff] }
 0x309   :  { %v1506_v59 = vmul.f32 %v1504_v58, %v2663_v47  ;;  %v1507_v60 = vmul.f32 %v2661_v46, %v1504_v58  ;;  %2339 = vmatpush3.bf16.xpose.msk.msra.mxu1 %vm2667_vm4, %v2988_v57  ;;  %v1939_v58 = vld [vmem:[%s3332_s7 + $0x3d0] sm:$0xff] }
 0x30a   :  { %2341 = vmatprep.subr.bf16.mxu1 %v2340_v56  ;;  %v2306_v56 = vpack.c.bf16 %v1877_v43, %v1876_v41  ;;  %v1903_v41 = vld [vmem:[%s3332_s7 + $0x2e8] sm:$0xff] }
 0x30b   :  { %v2410_v63 = vpop.eup %2409  ;;  %1510 = vrot.lane.b32.xlu0 %v1506_v59, %s2492_s30  ;;  %v1940_v59 = vld [vmem:[%s3332_s7 + $0x3d8] sm:$0xff] }
 0x30c   :  { %1512 = vrot.lane.b32.xlu1 %v1507_v60, %s2492_s30  ;;  %v3012_v3 = vmul.f32 %v2410_v63, %v2934_v29  ;;  %v2308_v60 = vpack.c.bf16 %v1895_v42, %v1894_v12  ;;  %v1896_v63 = vld [vmem:[%s3332_s7 + $0x2b0] sm:$0xff]  ;;  %v2360_v1 = vpack.c.bf16 %v1940_v59, %v1939_v58  ;;  %v1886_v12 = vld [vmem:[%s3332_s7 + $0x260] sm:$0xff]  ;;  %v1887_v42 = vld [vmem:[%s3332_s7 + $0x268] sm:$0xff] }
 0x30d   :  { %v2312_v11 = vpack.c.bf16 %v1897_v0, %v1896_v63  ;;  %v1888_v58 = vld [vmem:[%s3332_s7 + $0x270] sm:$0xff]  ;;  %v1889_v59 = vld [vmem:[%s3332_s7 + $0x278] sm:$0xff] }
 0x30e   :  { %2161 = vmatprep.mubr.msk.f32.mxu0 %vm272_vm3, %v3012_v3 }
 0x30f   :  { %v2412_v15 = vpop.eup %2411 }
 0x310   :  { %2183 = vmatmul.mubr.msk.f32.vlgmr.msra.gmra.mrb[10].mxu1 %vm272_vm3, %v1415_v7  ;;  %v3039_v50 = vmul.f32 %v2412_v15, %v2943_v39  ;;  %v2310_v7 = vpack.c.bf16 %v1879_v62, %v1878_v61  ;;  %v1898_v15 = vld [vmem:[%s3332_s7 + $0x2c0] sm:$0xff] }
 0x311   :  { %2343 = vmatpush3.bf16.msra.mxu1 %v2342_v8  ;;  %1621 = vmatprep.mubr.f32.mxu1 %v2786_v53  ;;  %v1941_v8 = vld [vmem:[%s3332_s7 + $0x3e0] sm:$0xff]  ;;  %v2316_v24 = vpack.c.bf16 %v1899_v16, %v1898_v15 }
 0x312   :  { %2162 = vmatmul.mubr.msk.f32.vlgmr.msra.gmra.mrb[10].mxu0 %vm272_vm3, %v3039_v50  ;;  %2345 = vmatprep.subr.bf16.mxu1 %v2344_v52  ;;  %v1880_v52 = vld [vmem:[%s3332_s7 + $0x230] sm:$0xff]  ;;  %v2364_v17 = vpack.c.bf16 %v1942_v9, %v1941_v8 }
 0x313   :  { %2299 = vmatpush3.bf16.xpose.msk.msra.mxu0 %vm2667_vm4, %v3041_v19  ;;  %2168 = vmatprep.mubr.msk.f32.mxu0 %vm2486_vm2, %v2484_v10  ;;  %v1892_v10 = vld [vmem:[%s3332_s7 + $0x290] sm:$0xff]  ;;  %vm1023_vm4 = vcmask 261248  }
 0x314   :  { %2301 = vmatprep.subr.bf16.mxu0 %v2300_v18  ;;  %v2304_v40 = vpack.c.bf16 %v1893_v31, %v1892_v10  ;;  %v1925_v18 = vld [vmem:[%s3332_s7 + $0x360] sm:$0xff]  ;;  %v1901_v10 = vld [vmem:[%s3332_s7 + $0x2d8] sm:$0xff]  ;;  %v2368_v31 = vpack.c.bf16 %v1944_v23, %v1943_v22 }
 0x315   :  { %2347 = vmatpush3.bf16.msra.mxu1 %v2346_v20  ;;  %v1926_v20 = vld [vmem:[%s3332_s7 + $0x368] sm:$0xff] }
 0x316   :  { %2349 = vmatprep.subr.bf16.mxu1 %v2348_v21  ;;  %v2314_v21 = vpack.c.bf16 %v1881_v13, %v1880_v52  ;;  %v2366_v48 = vpack.c.bf16 %v1926_v20, %v1925_v18 }
 0x319   :  { %2351 = vmatpush3.bf16.msra.mxu1 %v2350_v30  ;;  %v1900_v30 = vld [vmem:[%s3332_s7 + $0x2d0] sm:$0xff] }
 0x31a   :  { %2169 = vmatmul.mubr.msk.f32.vlgmr.msra.gmra.mrb[12].mxu0 %vm272_vm3, %v1026_v35  ;;  %2353 = vmatprep.subr.bf16.mxu1 %v2352_v32  ;;  %v1927_v32 = vld [vmem:[%s3332_s7 + $0x370] sm:$0xff]  ;;  %v2320_v35 = vpack.c.bf16 %v1901_v10, %v1900_v30 }
 0x31b   :  { %2303 = vmatpush3.bf16.msra.mxu0 %v2302_v36  ;;  %1232 = vmatprep.mubr.f32.mxu0 %v2786_v53  ;;  %v2358_v53 = vpack.c.bf16 %v1922_v55, %v1921_v54  ;;  %v1884_v36 = vld [vmem:[%s3332_s7 + $0x250] sm:$0xff]  ;;  %v2370_v38 = vpack.c.bf16 %v1928_v51, %v1927_v32  ;;  %v1905_v54 = vld [vmem:[%s3332_s7 + $0x2f8] sm:$0xff]  ;;  %v2326_v55 = vpack.c.bf16 %v1887_v42, %v1886_v12 }
 0x31c   :  { %2305 = vmatprep.subr.bf16.mxu0 %v2304_v40  ;;  %v1902_v40 = vld [vmem:[%s3332_s7 + $0x2e0] sm:$0xff]  ;;  %v2322_v43 = vpack.c.bf16 %v1885_v37, %v1884_v36 }
 0x31d   :  { %2355 = vmatpush3.bf16.msra.mxu1 %v2354_v44  ;;  %v2324_v44 = vpack.c.bf16 %v1903_v41, %v1902_v40 }
 0x31e   :  { %2357 = vmatprep.subr.bf16.mxu1 %v2356_v49  ;;  %v1904_v49 = vld [vmem:[%s3332_s7 + $0x2f0] sm:$0xff]  ;;  %s1945_s7 = sld [smem:[#allocation2 + $0x3]] }
 0x31f   :  { %2307 = vmatpush3.bf16.msra.mxu0 %v2306_v56  ;;  %v2328_v56 = vpack.c.bf16 %v1905_v54, %v1904_v49 }
 0x320   :  { %2309 = vmatprep.subr.bf16.mxu0 %v2308_v60  ;;  %v2330_v60 = vpack.c.bf16 %v1889_v59, %v1888_v58 }
 0x321   :  { %2359 = vmatpush3.bf16.msra.mxu1 %v2358_v53 }
 0x322   :  { %2361 = vmatprep.subr.bf16.mxu1 %v2360_v1 }
 0x323   :  { %2311 = vmatpush3.bf16.msra.mxu0 %v2310_v7 }
 0x324   :  { %2313 = vmatprep.subr.bf16.mxu0 %v2312_v11  ;;  %v1556_v20 = vstv %s1945_s7 }
 0x325   :  { %2363 = vmatpush3.bf16.msra.mxu1 %v2362_v14 }
 0x326   :  { %2365 = vmatprep.subr.bf16.mxu1 %v2364_v17 }
 0x327   :  { %2315 = vmatpush3.bf16.msra.mxu0 %v2314_v21 }
 0x328   :  { %2317 = vmatprep.subr.bf16.mxu0 %v2316_v24 }
 0x329   :  { %2367 = vmatpush3.bf16.msra.mxu1 %v2366_v48  ;;  %v1167_v48 = vstv %s3233_s14 }
 0x32a   :  { %2369 = vmatprep.subr.bf16.mxu1 %v2368_v31 }
 0x32b   :  { %2319 = vmatpush3.bf16.msra.mxu0 %v2318_v34 }
 0x32c   :  { %2321 = vmatprep.subr.bf16.mxu0 %v2320_v35 }
 0x32d   :  { %2371 = vmatpush3.bf16.msra.mxu1 %v2370_v38 }
 0x32f   :  { %2323 = vmatpush3.bf16.msra.mxu0 %v2322_v43 }
 0x330   :  { %1622 = vmatmul.mubr.f32.vlgmr.msra.gmra.mrb[12].mxu1 %v2798_v2  ;;  %2325 = vmatprep.subr.bf16.mxu0 %v2324_v44 }
 0x331   :  { %1626 = vmatprep.mubr.f32.mxu1 %v2801_v4 }
 0x333   :  { %2327 = vmatpush3.bf16.msra.mxu0 %v2326_v55 }
 0x334   :  { %1627 = vmatmul.mubr.f32.gmra.mrb[14].mxu1 %v2806_v45  ;;  %2329 = vmatprep.subr.bf16.mxu0 %v2328_v56 }
 0x337   :  { %2331 = vmatpush3.bf16.msra.mxu0 %v2330_v60 }
 0x338   :  { %2333 = vmatprep.subr.bf16.mxu0 %v3041_v19 }
 0x33a   :  { %1233 = vmatmul.mubr.f32.vlgmr.msra.gmra.mrb[14].mxu0 %v2798_v2 }
 0x33b   :  { %1237 = vmatprep.mubr.f32.mxu0 %v2801_v4  ;;  %2335 = vmatpush3.bf16.msra.mxu0 %v3041_v19 }
 0x33c   :  { %2373 = vmatprep.subr.bf16.mxu0 %v2988_v57 }
 0x33e   :  { %1238 = vmatmul.mubr.f32.gmra.mrb[16].mxu0 %v2806_v45 }
 0x379   :  { %v1122_v61 = vpop.permute.xlu0 %1121 }
 0x37a   :  { %v1124_v62 = vpop.permute.xlu1 %1123  ;;  %v1127_v53 = vsel %vm272_vm3, %v1122_v61, 0.0 }
 0x37b   :  { %1128 = vadd.xlane.f32.xlu0 %v1127_v53  ;;  %v1130_v63 = vsel %vm272_vm3, %v1124_v62, 0.0 }
 0x37c   :  { %1131 = vadd.xlane.f32.xlu1 %v1130_v63 }
 0x37d   :  { %v1511_v0 = vpop.permute.xlu0 %1510 }
 0x37e   :  { %v1516_v1 = vsel %vm272_vm3, %v1511_v0, 0.0  ;;  %v1513_v2 = vpop.permute.xlu1 %1512 }
 0x37f   :  { %1517 = vadd.xlane.f32.xlu0 %v1516_v1  ;;  %v1519_v4 = vsel %vm272_vm3, %v1513_v2, 0.0 }
 0x383   :  { %1520 = vadd.xlane.f32.xlu0 %v1519_v4 }
 0x395   :  { %v3225_v19 = vpop.f32.mrb[8].mxu0 }
 0x396   :  { %v3227_v5 = vpop.f32.mrb[9].mxu0 }
 0x3e3   :  { %v1494_v45 = vpop.f32.mrb[10].mxu1 }
 0x3e4   :  { %v2184_v6 = vpop.f32.mrb[11].mxu1  ;;  %v1635_v21 = vrot.slane %v1494_v45, %v2759_v26 }
 0x3e5   :  { %v3229_v7 = vpop.f32.mrb[10].mxu0 }
 0x3e6   :  { %v3231_v8 = vpop.f32.mrb[11].mxu0 }
 0x3ed   :  { %v1105_v9 = vpop.f32.mrb[12].mxu0 }
 0x3ee   :  { %v2170_v11 = vpop.f32.mrb[13].mxu0  ;;  %v1246_v28 = vrot.slane %v1105_v9, %v2759_v26 }
 0x403   :  { %v2121_v52 = vpop.f32.mrb[12].mxu1 }
 0x404   :  { %v2122_v13 = vpop.f32.mrb[13].mxu1 }
 0x405   :  { %v2123_v14 = vadd.f32 %v2122_v13, %v2121_v52  ;;  %v886_v13 = vsel %vm272_vm3, %v3012_v3, 0.0 }
 0x407   :  { %v2124_v15 = vpop.f32.mrb[14].mxu1  ;;  %v1624_v23 = vadd.f32 %v2123_v14, %v1556_v20  ;;  %v889_v14 = vsel %vm272_vm3, %v3039_v50, 0.0 }
 0x408   :  { %v2125_v16 = vpop.f32.mrb[15].mxu1  ;;  %v1129_v17 = vpop.xlane.xlu0 %1128 }
 0x409   :  { %v2126_v18 = vadd.f32 %v2125_v16, %v2124_v15  ;;  %v1247_v51 = vadd.f32 %v1246_v28, %v1129_v17  ;;  %v1132_v35 = vpop.xlane.xlu1 %1131 }
 0x40a   :  { %v1248_v42 = vadd.f32 %v1246_v28, %v1132_v35 }
 0x40b   :  { %v1629_v32 = vadd.f32 %v2126_v18, %v1556_v20 }
 0x40c   :  { %v1518_v22 = vpop.xlane.xlu0 %1517 }
 0x40d   :  { %v1636_v24 = vadd.f32 %v1635_v21, %v1518_v22  ;;  %v2076_v25 = vpop.f32.mrb[14].mxu0 }
 0x40e   :  { %v2077_v30 = vpop.f32.mrb[15].mxu0 }
 0x40f   :  { %v1638_v10 = vadd.f32 %v1636_v24, %v1624_v23  ;;  %v2078_v31 = vadd.f32 %v2077_v30, %v2076_v25 }
 0x410   :  { %v1521_v34 = vpop.xlane.xlu0 %1520 }
 0x411   :  { %v1642_v36 = vmul.f32 0.2, %v1638_v10  ;;  %v1235_v37 = vadd.f32 %v2078_v31, %v1167_v48  ;;  %v1637_v38 = vadd.f32 %v1635_v21, %v1521_v34  ;;  %v2079_v40 = vpop.f32.mrb[16].mxu0  ;;  %vm1640_vm15 = vcmp.ge.f32.partialorder %v1638_v10, 0.0 }
 0x412   :  { %v2080_v41 = vpop.f32.mrb[17].mxu0 }
 0x413   :  { %v1249_v43 = vadd.f32 %v1247_v51, %v1235_v37  ;;  %v1639_v44 = vadd.f32 %v1637_v38, %v1629_v32  ;;  %v2081_v12 = vadd.f32 %v2080_v41, %v2079_v40  ;;  %v1644_v49 = vsel %vm1640_vm15, %v1638_v10, %v1642_v36 }
 0x414   :  { %v1646_v60 = vmul.f32 0.5, %v1644_v49  ;;  %v510_v37 = vsel %vm272_vm3, %v2974_v33, 0.0 }
 0x415   :  { %v1643_v26 = vmul.f32 0.2, %v1639_v44  ;;  %v1240_v54 = vadd.f32 %v2081_v12, %v1167_v48  ;;  %vm1251_vm0 = vcmp.ge.f32.partialorder %v1249_v43, 0.0  ;;  %v1253_v55 = vmul.f32 0.2, %v1249_v43 }
 0x416   :  { %vm1641_vm1 = vcmp.ge.f32.partialorder %v1639_v44, 0.0  ;;  %v1648_v2 = vsel %vm489_vm10, %v1646_v60, -1e+30 }
 0x417   :  { %v1250_v56 = vadd.f32 %v1248_v42, %v1240_v54  ;;  %v1255_v58 = vsel %vm1251_vm0, %v1249_v43, %v1253_v55  ;;  %v1645_v62 = vsel %vm1641_vm1, %v1639_v44, %v1643_v26  ;;  %v1650_v9 = vsel %vm272_vm3, %v1648_v2, -inf }
 0x418   :  { %v1257_v59 = vmul.f32 0.5, %v1255_v58  ;;  %v1647_v4 = vmul.f32 0.5, %v1645_v62 }
 0x419   :  { %vm1252_vm2 = vcmp.ge.f32.partialorder %v1250_v56, 0.0  ;;  %v1254_v61 = vmul.f32 0.2, %v1250_v56 }
 0x41a   :  { %v1259_v53 = vsel %vm489_vm10, %v1257_v59, -1e+30  ;;  %v1649_v11 = vsel %vm490_vm12, %v1647_v4, -1e+30 }
 0x41b   :  { %v1261_v63 = vsel %vm272_vm3, %v1259_v53, -inf  ;;  %v1256_v0 = vsel %vm1252_vm2, %v1250_v56, %v1254_v61  ;;  %v1653_v52 = vsel %vm272_vm3, %v1649_v11, -inf }
 0x41c   :  { %1262 = vmax.xlane.f32.xlu1 %v1261_v63  ;;  %v1258_v1 = vmul.f32 0.5, %v1256_v0 }
 0x41e   :  { %v1260_v45 = vsel %vm490_vm12, %v1258_v1, -1e+30 }
 0x41f   :  { %v1264_v6 = vsel %vm272_vm3, %v1260_v45, -inf }
 0x420   :  { %1265 = vmax.xlane.f32.xlu0 %v1264_v6  ;;  %1651 = vmax.xlane.f32.xlu1 %v1650_v9 }
 0x424   :  { %1654 = vmax.xlane.f32.xlu0 %v1653_v52  ;;  %887 = vadd.xlane.f32.xlu1 %v886_v13 }
 0x428   :  { %890 = vadd.xlane.f32.xlu0 %v889_v14 }
 0x4a9   :  { %v1263_v15 = vpop.xlane.xlu1 %1262 }
 0x4aa   :  { %v1267_v16 = vsub.f32 %v1259_v53, %v1263_v15 }
 0x4ac   :  { %v1269_v17 = vmul.f32 1.442695, %v1267_v16 }
 0x4ad   :  { %v1266_v18 = vpop.xlane.xlu0 %1265  ;;  %v1652_v20 = vpop.xlane.xlu1 %1651 }
 0x4ae   :  { %2413 = vpow2.f32 %v1269_v17  ;;  %v1268_v21 = vsub.f32 %v1260_v45, %v1266_v18  ;;  %v1656_v22 = vsub.f32 %v1648_v2, %v1652_v20 }
 0x4b0   :  { %v1271_v23 = vmul.f32 1.442695, %v1268_v21  ;;  %v1658_v24 = vmul.f32 1.442695, %v1656_v22 }
 0x4b1   :  { %v1655_v25 = vpop.xlane.xlu0 %1654  ;;  %v888_v38 = vpop.xlane.xlu1 %887 }
 0x4b2   :  { %2415 = vpow2.f32 %v1271_v23  ;;  %v1657_v28 = vsub.f32 %v1649_v11, %v1655_v25 }
 0x4b3   :  { %2417 = vpow2.f32 %v1658_v24 }
 0x4b4   :  { %v1660_v3 = vmul.f32 1.442695, %v1657_v28 }
 0x4b5   :  { %v891_v40 = vpop.xlane.xlu0 %890 }
 0x4b6   :  { %2419 = vpow2.f32 %v1660_v3 }
 0x4b7   :  { %2421 = vrcp.f32 %v888_v38 }
 0x4b8   :  { %v2414_v48 = vpop.eup %2413  ;;  %2423 = vrcp.f32 %v891_v40 }
 0x4b9   :  { %v1273_v50 = vmul.f32 %v2414_v48, %v2934_v29 }
 0x4bb   :  { %2175 = vmatprep.mubr.msk.f32.mxu0 %vm272_vm3, %v1273_v50 }
 0x4bc   :  { %v2416_v30 = vpop.eup %2415 }
 0x4bd   :  { %v2418_v10 = vpop.eup %2417  ;;  %v1274_v31 = vmul.f32 %v2416_v30, %v2943_v39 }
 0x4be   :  { %v1662_v32 = vmul.f32 %v2418_v10, %v2934_v29 }
 0x4bf   :  { %2176 = vmatmul.mubr.msk.f32.vlgmr.msra.gmra.mrb[18].mxu0 %vm272_vm3, %v1274_v31  ;;  %v1278_v29 = vsel %vm272_vm3, %v1274_v31, 0.0 }
 0x4c0   :  { %v2420_v51 = vpop.eup %2419  ;;  %2375 = vmatpush3.bf16.msra.mxu0 %v2988_v57  ;;  %2189 = vmatprep.mubr.msk.f32.mxu0 %vm272_vm3, %v1662_v32  ;;  %v1664_v34 = vsel %vm272_vm3, %v1662_v32, 0.0  ;;  %v507_v57 = vsel %vm272_vm3, %v2969_v27, 0.0 }
 0x4c1   :  { %1665 = vadd.xlane.f32.xlu1 %v1664_v34  ;;  %v1663_v35 = vmul.f32 %v2420_v51, %v2943_v39  ;;  %v1275_v39 = vsel %vm272_vm3, %v1273_v50, 0.0  ;;  %v2422_v43 = vpop.eup %2421 }
 0x4c2   :  { %v2424_v44 = vpop.eup %2423  ;;  %v977_v27 = vmul.f32 %v2422_v43, %v3231_v8 }
 0x4c3   :  { %2190 = vmatmul.mubr.msk.f32.vlgmr.msra.gmra.mrb[20].mxu0 %vm272_vm3, %v1663_v35  ;;  %v1667_v36 = vsel %vm272_vm3, %v1663_v35, 0.0  ;;  %v978_v33 = vmul.f32 %v2424_v44, %v3229_v7 }
 0x4c4   :  { %1668 = vadd.xlane.f32.xlu0 %v1667_v36 }
 0x4d2   :  { %979 = vrot.lane.b32.xlu1 %v2663_v47, %s2491_s0 }
 0x4d6   :  { %1368 = vrot.lane.b32.xlu1 %v2663_v47, %s2490_s11 }
 0x4da   :  { %1370 = vrot.lane.b32.xlu1 %v2661_v46, %s2490_s11  ;;  %981 = vrot.lane.b32.xlu0 %v2661_v46, %s2491_s0 }
 0x4f9   :  { %1279 = vadd.xlane.f32.xlu0 %v1278_v29 }
 0x4fe   :  { %1276 = vadd.xlane.f32.xlu1 %v1275_v39 }
 0x50f   :  { %1759 = vrot.lane.b32.xlu1 %v2661_v46, %s2488_s9  ;;  %1757 = vrot.lane.b32.xlu0 %v2663_v47, %s2488_s9 }
 0x52e   :  { %508 = vadd.xlane.f32.xlu0 %v507_v57 }
 0x533   :  { %511 = vadd.xlane.f32.xlu1 %v510_v37 }
 0x544   :  { %600 = vrot.lane.b32.xlu1 %v2661_v46, %s2493_s15  ;;  %598 = vrot.lane.b32.xlu0 %v2663_v47, %s2493_s15 }
 0x54e   :  { %v1666_v41 = vpop.xlane.xlu1 %1665 }
 0x551   :  { %v1669_v12 = vpop.xlane.xlu0 %1668 }
 0x552   :  { %v980_v42 = vpop.permute.xlu1 %979 }
 0x553   :  { %v985_v49 = vadd.f32 %v980_v42, %v977_v27 }
 0x555   :  { %v982_v26 = vpop.permute.xlu0 %981  ;;  %v987_v55 = vsel %vm272_vm3, %v985_v49, 0.0 }
 0x556   :  { %v986_v54 = vadd.f32 %v982_v26, %v978_v33  ;;  %v1369_v16 = vpop.permute.xlu1 %1368 }
 0x558   :  { %v988_v46 = vsel %vm272_vm3, %v986_v54, 0.0 }
 0x559   :  { %v989_v56 = vadd.f32 %v988_v46, %v987_v55 }
 0x55a   :  { %v1371_v18 = vpop.permute.xlu1 %1370 }
 0x55b   :  { %v990_v47 = vrot.slane %v989_v56, 4 }
 0x55d   :  { %v991_v58 = vadd.f32 %v990_v47, %v989_v56 }
 0x55f   :  { %v992_v59 = vrot.slane %v991_v58, 2 }
 0x561   :  { %v993_v60 = vadd.f32 %v992_v59, %v991_v58 }
 0x563   :  { %v994_v61 = vrot.slane %v993_v60, 1 }
 0x565   :  { %v995_v62 = vadd.f32 %v994_v61, %v993_v60 }
 0x567   :  { %v996_v53 = vmul.f32 0.0625, %v995_v62 }
 0x569   :  { %v997_v63 = vsub.f32 %v985_v49, %v996_v53  ;;  %v998_v8 = vsub.f32 %v986_v54, %v996_v53 }
 0x56b   :  { %v999_v0 = vmul.f32 %v997_v63, %v997_v63  ;;  %v1000_v1 = vmul.f32 %v998_v8, %v998_v8 }
 0x56d   :  { %v1001_v7 = vsel %vm272_vm3, %v999_v0, 0.0  ;;  %v1002_v2 = vsel %vm272_vm3, %v1000_v1, 0.0 }
 0x56e   :  { %v1003_v4 = vadd.f32 %v1002_v2, %v1001_v7 }
 0x570   :  { %v1004_v45 = vrot.slane %v1003_v4, 4 }
 0x572   :  { %v1005_v6 = vadd.f32 %v1004_v45, %v1003_v4 }
 0x574   :  { %v1006_v9 = vrot.slane %v1005_v6, 2 }
 0x576   :  { %v1007_v11 = vadd.f32 %v1006_v9, %v1005_v6 }
 0x578   :  { %v1008_v52 = vrot.slane %v1007_v11, 1 }
 0x57a   :  { %v1009_v13 = vadd.f32 %v1008_v52, %v1007_v11 }
 0x57c   :  { %v1010_v14 = vmul.f32 0.0625, %v1009_v13 }
 0x57e   :  { %v1011_v15 = vadd.f32 1e-05, %v1010_v14 }
 0x580   :  { %2425 = vrsqrt.f32 %v1011_v15 }
 0x586   :  { %v1280_v17 = vpop.xlane.xlu0 %1279 }
 0x587   :  { %2427 = vrcp.f32 %v1280_v17 }
 0x588   :  { %2429 = vrcp.f32 %v1669_v12 }
 0x58a   :  { %v2426_v20 = vpop.eup %2425  ;;  %v1758_v29 = vpop.permute.xlu0 %1757 }
 0x58b   :  { %v1277_v21 = vpop.xlane.xlu1 %1276  ;;  %v1014_v22 = vmul.f32 %v2426_v20, %v998_v8  ;;  %v1013_v23 = vmul.f32 %v2426_v20, %v997_v63 }
 0x58c   :  { %2431 = vrcp.f32 %v1277_v21 }
 0x58d   :  { %2433 = vrcp.f32 %v1666_v41  ;;  %1019 = vrot.lane.b32.xlu1 %v1014_v22, %s2488_s9  ;;  %1017 = vrot.lane.b32.xlu0 %v1013_v23, %s2488_s9  ;;  %s2494_s9 = smov [#allocation5]  }
 0x58f   :  { %v1760_v35 = vpop.permute.xlu1 %1759 }
 0x591   :  { %v2428_v24 = vpop.eup %2427 }
 0x592   :  { %v2177_v25 = vpop.f32.mrb[18].mxu0  ;;  %v2430_v48 = vpop.eup %2429 }
 0x593   :  { %v1367_v28 = vmul.f32 %v2428_v24, %v2177_v25  ;;  %v1355_v3 = vpop.f32.mrb[19].mxu0 }
 0x595   :  { %v1375_v31 = vadd.f32 %v1371_v18, %v1367_v28 }
 0x596   :  { %v2432_v50 = vpop.eup %2431  ;;  %v2191_v30 = vpop.f32.mrb[20].mxu0 }
 0x597   :  { %v2434_v10 = vpop.eup %2433  ;;  %v1366_v32 = vmul.f32 %v2432_v50, %v1355_v3  ;;  %v1756_v51 = vmul.f32 %v2430_v48, %v2191_v30  ;;  %v1744_v34 = vpop.f32.mrb[21].mxu0  ;;  %v1377_v38 = vsel %vm272_vm3, %v1375_v31, 0.0 }
 0x598   :  { %v1755_v36 = vmul.f32 %v2434_v10, %v1744_v34 }
 0x599   :  { %v1374_v39 = vadd.f32 %v1369_v16, %v1366_v32  ;;  %v1764_v57 = vadd.f32 %v1760_v35, %v1756_v51 }
 0x59a   :  { %v1763_v37 = vadd.f32 %v1758_v29, %v1755_v36 }
 0x59b   :  { %v1376_v40 = vsel %vm272_vm3, %v1374_v39, 0.0  ;;  %v1766_v41 = vsel %vm272_vm3, %v1764_v57, 0.0 }
 0x59c   :  { %v1378_v43 = vadd.f32 %v1377_v38, %v1376_v40  ;;  %v1765_v44 = vsel %vm272_vm3, %v1763_v37, 0.0 }
 0x59d   :  { %v1767_v12 = vadd.f32 %v1766_v41, %v1765_v44 }
 0x59e   :  { %v1379_v27 = vrot.slane %v1378_v43, 4 }
 0x59f   :  { %v1768_v42 = vrot.slane %v1767_v12, 4 }
 0x5a0   :  { %v1380_v49 = vadd.f32 %v1379_v27, %v1378_v43 }
 0x5a1   :  { %v1769_v33 = vadd.f32 %v1768_v42, %v1767_v12 }
 0x5a2   :  { %v1381_v26 = vrot.slane %v1380_v49, 2 }
 0x5a3   :  { %v1770_v54 = vrot.slane %v1769_v33, 2 }
 0x5a4   :  { %v1382_v55 = vadd.f32 %v1381_v26, %v1380_v49 }
 0x5a5   :  { %v1771_v46 = vadd.f32 %v1770_v54, %v1769_v33 }
 0x5a6   :  { %v1383_v56 = vrot.slane %v1382_v55, 1 }
 0x5a7   :  { %v1772_v47 = vrot.slane %v1771_v46, 1 }
 0x5a8   :  { %v1384_v58 = vadd.f32 %v1383_v56, %v1382_v55 }
 0x5a9   :  { %v1773_v59 = vadd.f32 %v1772_v47, %v1771_v46 }
 0x5aa   :  { %v1385_v60 = vmul.f32 0.0625, %v1384_v58 }
 0x5ab   :  { %v1774_v61 = vmul.f32 0.0625, %v1773_v59 }
 0x5ac   :  { %v1386_v62 = vsub.f32 %v1374_v39, %v1385_v60  ;;  %v1387_v53 = vsub.f32 %v1375_v31, %v1385_v60 }
 0x5ad   :  { %v1775_v63 = vsub.f32 %v1763_v37, %v1774_v61  ;;  %v1776_v8 = vsub.f32 %v1764_v57, %v1774_v61 }
 0x5ae   :  { %v1388_v0 = vmul.f32 %v1386_v62, %v1386_v62  ;;  %v1389_v1 = vmul.f32 %v1387_v53, %v1387_v53 }
 0x5af   :  { %v1777_v7 = vmul.f32 %v1775_v63, %v1775_v63  ;;  %v1778_v2 = vmul.f32 %v1776_v8, %v1776_v8 }
 0x5b0   :  { %v1390_v4 = vsel %vm272_vm3, %v1388_v0, 0.0  ;;  %v1391_v45 = vsel %vm272_vm3, %v1389_v1, 0.0 }
 0x5b1   :  { %v1779_v6 = vsel %vm272_vm3, %v1777_v7, 0.0  ;;  %v1392_v9 = vadd.f32 %v1391_v45, %v1390_v4  ;;  %v1780_v11 = vsel %vm272_vm3, %v1778_v2, 0.0 }
 0x5b2   :  { %v1781_v52 = vadd.f32 %v1780_v11, %v1779_v6 }
 0x5b3   :  { %v1393_v13 = vrot.slane %v1392_v9, 4 }
 0x5b4   :  { %v1782_v14 = vrot.slane %v1781_v52, 4 }
 0x5b5   :  { %v1394_v15 = vadd.f32 %v1393_v13, %v1392_v9 }
 0x5b6   :  { %v1783_v16 = vadd.f32 %v1782_v14, %v1781_v52 }
 0x5b7   :  { %v1395_v17 = vrot.slane %v1394_v15, 2 }
 0x5b8   :  { %v1784_v18 = vrot.slane %v1783_v16, 2 }
 0x5b9   :  { %v1396_v20 = vadd.f32 %v1395_v17, %v1394_v15 }
 0x5ba   :  { %v1785_v21 = vadd.f32 %v1784_v18, %v1783_v16 }
 0x5bb   :  { %v509_v22 = vpop.xlane.xlu0 %508  ;;  %v1397_v23 = vrot.slane %v1396_v20, 1 }
 0x5bc   :  { %2435 = vrcp.f32 %v509_v22  ;;  %v1786_v24 = vrot.slane %v1785_v21, 1 }
 0x5bd   :  { %v1398_v25 = vadd.f32 %v1397_v23, %v1396_v20 }
 0x5be   :  { %v1787_v28 = vadd.f32 %v1786_v24, %v1785_v21 }
 0x5bf   :  { %v1399_v3 = vmul.f32 0.0625, %v1398_v25  ;;  %v599_v34 = vpop.permute.xlu0 %598 }
 0x5c0   :  { %v512_v48 = vpop.xlane.xlu1 %511  ;;  %v1788_v50 = vmul.f32 0.0625, %v1787_v28 }
 0x5c1   :  { %2437 = vrcp.f32 %v512_v48  ;;  %v1400_v30 = vadd.f32 1e-05, %v1399_v3 }
 0x5c2   :  { %v1789_v10 = vadd.f32 1e-05, %v1788_v50 }
 0x5c3   :  { %2439 = vrsqrt.f32 %v1400_v30 }
 0x5c4   :  { %2441 = vrsqrt.f32 %v1789_v10  ;;  %v601_v39 = vpop.permute.xlu1 %600 }
 0x5c6   :  { %v2436_v31 = vpop.eup %2435 }
 0x5c7   :  { %v596_v32 = vmul.f32 %v2436_v31, %v3227_v5 }
 0x5c9   :  { %v604_v35 = vadd.f32 %v599_v34, %v596_v32 }
 0x5cb   :  { %v2438_v51 = vpop.eup %2437  ;;  %v606_v44 = vsel %vm272_vm3, %v604_v35, 0.0 }
 0x5cc   :  { %v597_v36 = vmul.f32 %v2438_v51, %v3225_v19 }
 0x5cd   :  { %v2440_v29 = vpop.eup %2439 }
 0x5ce   :  { %v2442_v57 = vpop.eup %2441  ;;  %v605_v37 = vadd.f32 %v601_v39, %v597_v36  ;;  %v1403_v38 = vmul.f32 %v2440_v29, %v1387_v53  ;;  %v1402_v40 = vmul.f32 %v2440_v29, %v1386_v62 }
 0x5cf   :  { %v1792_v41 = vmul.f32 %v2442_v57, %v1776_v8  ;;  %v1791_v43 = vmul.f32 %v2442_v57, %v1775_v63 }
 0x5d0   :  { %v607_v12 = vsel %vm272_vm3, %v605_v37, 0.0  ;;  %1408 = vrot.lane.b32.xlu1 %v1403_v38, %s2490_s11  ;;  %1406 = vrot.lane.b32.xlu0 %v1402_v40, %s2490_s11  ;;  %s1809_s11 = sshll.u32 %s2494_s9, 4  ;;  %s1810_s11 = int_to_ptr.vmem [resolvable:$true] %s1809_s11 }
 0x5d1   :  { %v608_v5 = vadd.f32 %v607_v12, %v606_v44  ;;  %p2462_p6 = scmp.lt.s32.totalorder %s1810_s11, %s1810_s11 }
 0x5d3   :  { %v609_v27 = vrot.slane %v608_v5, 4 }
 0x5d4   :  { %1797 = vrot.lane.b32.xlu1 %v1792_v41, %s2491_s0  ;;  %1795 = vrot.lane.b32.xlu0 %v1791_v43, %s2491_s0  ;;  %s2457_s0 = scalar_lea.vmem %s1810_s11, 256 }
 0x5d5   :  { %v610_v19 = vadd.f32 %v609_v27, %v608_v5  ;;  %p2458_p5 = scmp.ne.s32.totalorder %s1810_s11, %s2457_s0  ;;  %p2463_p7 = scmp.lt.s32.totalorder %s2457_s0, %s2457_s0 }
 0x5d7   :  { %v611_v42 = vrot.slane %v610_v19, 2  ;;  %p2464_p8 = por %p2463_p7, %p2462_p6 }
 0x5d9   :  { %v612_v49 = vadd.f32 %v611_v42, %v610_v19  ;;  %p2465_p9 = pnand %p2464_p8, %p2458_p5 }
 0x5db   :  { %v613_v33 = vrot.slane %v612_v49, 1 }
 0x5dd   :  { %v614_v26 = vadd.f32 %v613_v33, %v612_v49 }
 0x5df   :  { %v616_v54 = vmul.f32 0.0625, %v614_v26 }
 0x5e1   :  { %v617_v55 = vsub.f32 %v604_v35, %v616_v54  ;;  %v618_v46 = vsub.f32 %v605_v37, %v616_v54 }
 0x5e3   :  { %v619_v56 = vmul.f32 %v617_v55, %v617_v55  ;;  %v620_v47 = vmul.f32 %v618_v46, %v618_v46 }
 0x5e5   :  { %v621_v58 = vsel %vm272_vm3, %v619_v56, 0.0  ;;  %v622_v59 = vsel %vm272_vm3, %v620_v47, 0.0 }
 0x5e6   :  { %v623_v60 = vadd.f32 %v622_v59, %v621_v58 }
 0x5e8   :  { %v624_v61 = vrot.slane %v623_v60, 4 }
 0x5ea   :  { %v625_v62 = vadd.f32 %v624_v61, %v623_v60 }
 0x5ec   :  { %v626_v53 = vrot.slane %v625_v62, 2 }
 0x5ee   :  { %v627_v63 = vadd.f32 %v626_v53, %v625_v62 }
 0x5f0   :  { %v628_v8 = vrot.slane %v627_v63, 1 }
 0x5f2   :  { %v629_v0 = vadd.f32 %v628_v8, %v627_v63 }
 0x5f4   :  { %v630_v1 = vmul.f32 0.0625, %v629_v0 }
 0x5f6   :  { %v631_v7 = vadd.f32 1e-05, %v630_v1 }
 0x5f8   :  { %2443 = vrsqrt.f32 %v631_v7 }
 0x5ff   :  { %v1018_v6 = vpop.permute.xlu0 %1017  ;;  %v1020_v9 = vpop.permute.xlu1 %1019 }
 0x602   :  { %v2444_v2 = vpop.eup %2443 }
 0x603   :  { %v634_v4 = vmul.f32 %v2444_v2, %v618_v46  ;;  %v633_v45 = vmul.f32 %v2444_v2, %v617_v55 }
 0x605   :  { %636 = vst.msk [vmem:[#allocation5 + $0x8] sm:$0xff] %vm272_vm3, %v634_v4  ;;  %635 = vst.msk [vmem:[#allocation5] sm:$0xff] %vm272_vm3, %v633_v45 }
 0x606   :  { %1024 = vst.msk [vmem:[#allocation5] sm:$0xff] %vm1023_vm4, %v1018_v6  ;;  %1025 = vst.msk [vmem:[#allocation5 + $0x8] sm:$0xff] %vm1023_vm4, %v1020_v9 }
 0x642   :  { %v1407_v11 = vpop.permute.xlu0 %1406  ;;  %v1409_v52 = vpop.permute.xlu1 %1408 }
 0x643   :  { %1413 = vst.msk [vmem:[#allocation5] sm:$0xff] %vm1412_vm5, %v1407_v11  ;;  %1414 = vst.msk [vmem:[#allocation5 + $0x8] sm:$0xff] %vm1412_vm5, %v1409_v52 }
 0x646   :  { %v1796_v13 = vpop.permute.xlu0 %1795  ;;  %v1798_v14 = vpop.permute.xlu1 %1797 }
 0x647   :  { %1802 = vst.msk [vmem:[#allocation5] sm:$0xff] %vm1801_vm6, %v1796_v13  ;;  %1803 = vst.msk [vmem:[#allocation5 + $0x8] sm:$0xff] %vm1801_vm6, %v1798_v14 }
 0x648   :  { %2468 = shalt.err (!%p2465_p9)
}
 0x649   :  { %s2469_s17 = scalar_lea.hbm %s3335_s10, 256 }
 0x64a   :  { %p2470_p10 = scmp.ne.s32.totalorder %s3335_s10, %s2469_s17  ;;  %p2473_p11 = scmp.lt.u32.totalorder %s2469_s17, %s3335_s10 }
 0x64c   :  { %p2475_p12 = pnand %p2473_p11, %p2470_p10 }
 0x64e   :  { %2478 = shalt.err (!%p2475_p12)
}
 0x64f   :  { %s2495_s22 = smov 128   ;;  %s2496_s23 = smov 8  }
 0x650   :  { %1815 = dma.vmem_to_hbm [thread:$0]  %s1810_s11, 256, %s3335_s10, [#allocation3], %s2495_s22, %s2495_s22, %s2496_s23  }
 0x651   :  { %2481 = dma.done.wait [#allocation3], 256  }
 0x652   :  { %2482 = vsyncadd [#allocation3], 4294967040 }
 0x653   :  { %1819 = vsyncpa [#allocation3], 1 }
 0x654   :  { %1820 = vsyncpa [#allocation4], 1 }

</bundles_post_ra>
